<compile_context>
chip_gen: v7x
topology: tpu7x:2x2x1
jax: 0.10.0
libtpu: 0.0.40
codegen_flags: <defaults>
</compile_context>

<pallas_src>
import jax
import jax.numpy as jnp
from jax.experimental import pallas as pl
from jax.experimental.pallas import tpu as pltpu

# Logical (PyTorch) feature sizes.
IN_FEATURES = 1000
HID1 = 500
HID2 = 100
NUM_CLASSES = 10

# Lane-padded sizes (multiples of 128) for the hidden / output dims.
D_H1 = 512
D_H2 = 128
D_OUT = 128


def _round_up(x, m):
    return (x + m - 1) // m * m


def _fc_out_kernel(x_ref, w2_ref, b2_ref, w3_ref, b3_ref, w4_ref, b4_ref, o_ref):
    # fc2 + ReLU. x is f32 in VMEM; cast to bf16 here (VPU cast hides under the
    # MXU). Contraction K=1000 is handled (internally padded/masked) by Mosaic.
    x = x_ref[...].astype(jnp.bfloat16)
    h = jnp.dot(x, w2_ref[...], preferred_element_type=jnp.float32)
    h = jnp.maximum(h + b2_ref[...], 0.0)
    # fc3 + ReLU (bf16 operands, f32 accumulation).
    h = jnp.dot(h.astype(jnp.bfloat16), w3_ref[...],
                preferred_element_type=jnp.float32)
    h = jnp.maximum(h + b3_ref[...], 0.0)
    # fc4
    logits = jnp.dot(h.astype(jnp.bfloat16), w4_ref[...],
                     preferred_element_type=jnp.float32)
    logits = logits + b4_ref[...]

    # Mask padded logit lanes (cols >= NUM_CLASSES) with a large negative
    # Python-float literal so they vanish from the softmax normalizer.
    col = jax.lax.broadcasted_iota(jnp.int32, logits.shape, 1)
    valid = col < NUM_CLASSES
    logits = jnp.where(valid, logits, -1e30)

    # Numerically-stable log_softmax over the feature axis (f32).
    m = jnp.max(logits, axis=-1, keepdims=True)
    shifted = logits - m
    lse = jnp.log(jnp.sum(jnp.exp(shifted), axis=-1, keepdims=True))
    logp = shifted - lse

    # bf16 store: zero the padded lanes (they are sliced off by the wrapper).
    logp = jnp.where(valid, logp, 0.0)
    o_ref[...] = logp.astype(o_ref.dtype)


def fc_output_model(x, params, *, b_tile=None):
    """x: (B, 1000) float32. params: bf16 weights (in,out) + f32 biases (1,out).

    Returns (B, NUM_CLASSES) bf16 log-probabilities.
    """
    B, F = x.shape
    assert F == IN_FEATURES

    if b_tile is None:
        if B <= 256:
            # One grid step: full-batch MXU pass, no per-step overhead, no
            # un-hidden softmax epilogue per tiny tile.
            b_tile = _round_up(B, 8)
        else:
            # >= 2 (even) parallel tiles so both v7x TensorCores get work;
            # tiles up to ~1024 rows (VMEM footprint is only a few MiB).
            n = max(2, pl.cdiv(B, 1024))
            n = n + (n % 2)
            b_tile = _round_up(pl.cdiv(B, n), 8)
    b_tile = int(min(1024, max(8, _round_up(int(b_tile), 8))))
    b_pad = _round_up(B, b_tile)
    n_tiles = b_pad // b_tile

    # Only batch padding (when needed) — no feature pad / dtype cast pass.
    xp = x if b_pad == B else jnp.pad(x, ((0, b_pad - B), (0, 0)))

    w2, b2 = params["w2"], params["b2"]
    w3, b3 = params["w3"], params["b3"]
    w4, b4 = params["w4"], params["b4"]

    const = lambda i: (0, 0)  # weights/biases: same block every grid step
    cost = pl.CostEstimate(
        flops=int(2 * b_pad * (IN_FEATURES * D_H1 + D_H1 * D_H2 + D_H2 * D_OUT)),
        transcendentals=int(b_pad * D_OUT),
        bytes_accessed=int(
            b_pad * IN_FEATURES * 4                        # f32 activations read
            + (w2.size + w3.size + w4.size) * 2            # bf16 weights
            + (b2.size + b3.size + b4.size) * 4            # f32 biases
            + b_pad * D_OUT * 2),                          # bf16 output write
    )

    out = pl.pallas_call(
        _fc_out_kernel,
        out_shape=jax.ShapeDtypeStruct((b_pad, D_OUT), jnp.bfloat16),
        grid=(n_tiles,),
        in_specs=[
            pl.BlockSpec((b_tile, IN_FEATURES), lambda i: (i, 0)),  # x tile
            pl.BlockSpec((IN_FEATURES, D_H1), const),               # w2 (resident)
            pl.BlockSpec((1, D_H1), const),                         # b2
            pl.BlockSpec((D_H1, D_H2), const),                      # w3
            pl.BlockSpec((1, D_H2), const),                         # b3
            pl.BlockSpec((D_H2, D_OUT), const),                     # w4
            pl.BlockSpec((1, D_OUT), const),                        # b4
        ],
        out_specs=pl.BlockSpec((b_tile, D_OUT), lambda i: (i, 0)),
        compiler_params=pltpu.CompilerParams(
            dimension_semantics=("parallel",)),
        cost_estimate=cost,
    )(xp, w2, b2, w3, b3, w4, b4)

    return out[:B, :NUM_CLASSES]


def init_params(key):
    """nn.Linear-style init U(-1/sqrt(fan_in), +1/sqrt(fan_in)).

    Weights stored (in, out) in bf16 with the OUTPUT dim zero-padded to a lane
    multiple; the fc2 input dim stays at 1000 (matches the un-padded x block).
    Biases stored (1, out_padded) in f32.
    """
    dims = [
        (IN_FEATURES, HID1, IN_FEATURES, D_H1, "2"),   # fc2: in-dim un-padded
        (HID1, HID2, D_H1, D_H2, "3"),
        (HID2, NUM_CLASSES, D_H2, D_OUT, "4"),
    ]
    params = {}
    for fan_in, fan_out, pin, pout, n in dims:
        key, kw, kb = jax.random.split(key, 3)
        bound = 1.0 / float(jnp.sqrt(jnp.float32(fan_in)))
        w = jax.random.uniform(kw, (fan_in, fan_out), jnp.float32, -bound, bound)
        b = jax.random.uniform(kb, (fan_out,), jnp.float32, -bound, bound)
        wp = jnp.zeros((pin, pout), jnp.float32).at[:fan_in, :fan_out].set(w)
        bp = jnp.zeros((1, pout), jnp.float32).at[0, :fan_out].set(b)
        params["w" + n] = wp.astype(jnp.bfloat16)
        params["b" + n] = bp
    return params


def _reference(x, params):
    """Pure-JAX reference using the same bf16-operand / f32-accum math."""
    xb = x.astype(jnp.bfloat16)
    h = jnp.maximum(
        jnp.dot(xb, params["w2"], preferred_element_type=jnp.float32)
        + params["b2"], 0.0)
    h = jnp.maximum(
        jnp.dot(h.astype(jnp.bfloat16), params["w3"],
                preferred_element_type=jnp.float32) + params["b3"], 0.0)
    logits = jnp.dot(h.astype(jnp.bfloat16), params["w4"],
                     preferred_element_type=jnp.float32) + params["b4"]
    return jax.nn.log_softmax(logits[:, :NUM_CLASSES], axis=-1)


if __name__ == "__main__":
    key = jax.random.PRNGKey(0)
    kx, kp = jax.random.split(key)

    B = 32
    x = jax.random.normal(kx, (B, IN_FEATURES), jnp.float32)
    params = init_params(kp)

    # Default heuristic: B=32 -> single (32, 1000) tile, one grid step.
    out = fc_output_model(x, params)
    out = jax.block_until_ready(out)

    ref = _reference(x, params)
    assert out.shape == (B, NUM_CLASSES)
    assert bool(jnp.all(jnp.isfinite(out)))
    err = float(jnp.max(jnp.abs(out.astype(jnp.float32) - ref)))
    assert jnp.allclose(out.astype(jnp.float32), ref, atol=3e-2, rtol=3e-2), err
    print("KERNEL_OK")
</pallas_src>

<mosaic_0001>
module attributes {stable_mosaic.version = 11 : i64} {
  func.func @_fc_out_kernel(%arg0: i32, %arg1: memref<32x1000xf32, #tpu.memory_space<vmem>>, %arg2: memref<1000x512xbf16, #tpu.memory_space<vmem>>, %arg3: memref<1x512xf32, #tpu.memory_space<vmem>>, %arg4: memref<512x128xbf16, #tpu.memory_space<vmem>>, %arg5: memref<1x128xf32, #tpu.memory_space<vmem>>, %arg6: memref<128x128xbf16, #tpu.memory_space<vmem>>, %arg7: memref<1x128xf32, #tpu.memory_space<vmem>>, %arg8: memref<32x128xbf16, #tpu.memory_space<vmem>>) attributes {dimension_semantics = [#tpu.dimension_semantics<parallel>], iteration_bounds = array<i64: 1>, scalar_prefetch = 0 : i64, scratch_operands = 0 : i64, tpu.core_type = #tpu.core_type<tc>, window_params = [{transform_indices = @transform_0, window_bounds = array<i64: 32, 1000>}, {pipeline_mode = #tpu.pipeline_mode<synchronous>, transform_indices = @transform_1, window_bounds = array<i64: 1000, 512>}, {pipeline_mode = #tpu.pipeline_mode<synchronous>, transform_indices = @transform_2, window_bounds = array<i64: 1, 512>}, {pipeline_mode = #tpu.pipeline_mode<synchronous>, transform_indices = @transform_3, window_bounds = array<i64: 512, 128>}, {pipeline_mode = #tpu.pipeline_mode<synchronous>, transform_indices = @transform_4, window_bounds = array<i64: 1, 128>}, {pipeline_mode = #tpu.pipeline_mode<synchronous>, transform_indices = @transform_5, window_bounds = array<i64: 128, 128>}, {pipeline_mode = #tpu.pipeline_mode<synchronous>, transform_indices = @transform_6, window_bounds = array<i64: 1, 128>}, {transform_indices = @transform_7, window_bounds = array<i64: 32, 128>}]} {
    %c0 = arith.constant 0 : index
    %c0_0 = arith.constant 0 : index
    %0 = vector.load %arg1[%c0, %c0_0] : memref<32x1000xf32, #tpu.memory_space<vmem>>, vector<32x1000xf32>
    %1 = arith.truncf %0 : vector<32x1000xf32> to vector<32x1000xbf16>
    %c0_1 = arith.constant 0 : index
    %c0_2 = arith.constant 0 : index
    %2 = vector.load %arg2[%c0_1, %c0_2] : memref<1000x512xbf16, #tpu.memory_space<vmem>>, vector<1000x512xbf16>
    %cst = arith.constant dense<0.000000e+00> : vector<32x512xf32>
    %3 = tpu.matmul %1, %2, %cst {dimension_numbers = #tpu.dot_dimension_numbers<[1], [0], [0], [1], [0, 0, 1, 1], [], []>} : vector<32x1000xbf16>, vector<1000x512xbf16>, vector<32x512xf32> -> vector<32x512xf32>
    %c0_3 = arith.constant 0 : index
    %c0_4 = arith.constant 0 : index
    %4 = vector.load %arg3[%c0_3, %c0_4] : memref<1x512xf32, #tpu.memory_space<vmem>>, vector<1x512xf32>
    %5 = vector.broadcast %4 : vector<1x512xf32> to vector<32x512xf32>
    %6 = arith.addf %3, %5 : vector<32x512xf32>
    %cst_5 = arith.constant 0.000000e+00 : f32
    %7 = vector.broadcast %cst_5 : f32 to vector<32x512xf32>
    %8 = arith.maximumf %6, %7 : vector<32x512xf32>
    %9 = arith.truncf %8 : vector<32x512xf32> to vector<32x512xbf16>
    %c0_6 = arith.constant 0 : index
    %c0_7 = arith.constant 0 : index
    %10 = vector.load %arg4[%c0_6, %c0_7] : memref<512x128xbf16, #tpu.memory_space<vmem>>, vector<512x128xbf16>
    %cst_8 = arith.constant dense<0.000000e+00> : vector<32x128xf32>
    %11 = tpu.matmul %9, %10, %cst_8 {dimension_numbers = #tpu.dot_dimension_numbers<[1], [0], [0], [1], [0, 0, 1, 1], [], []>} : vector<32x512xbf16>, vector<512x128xbf16>, vector<32x128xf32> -> vector<32x128xf32>
    %c0_9 = arith.constant 0 : index
    %c0_10 = arith.constant 0 : index
    %12 = vector.load %arg5[%c0_9, %c0_10] : memref<1x128xf32, #tpu.memory_space<vmem>>, vector<1x128xf32>
    %13 = vector.broadcast %12 : vector<1x128xf32> to vector<32x128xf32>
    %14 = arith.addf %11, %13 : vector<32x128xf32>
    %cst_11 = arith.constant 0.000000e+00 : f32
    %15 = vector.broadcast %cst_11 : f32 to vector<32x128xf32>
    %16 = arith.maximumf %14, %15 : vector<32x128xf32>
    %17 = arith.truncf %16 : vector<32x128xf32> to vector<32x128xbf16>
    %c0_12 = arith.constant 0 : index
    %c0_13 = arith.constant 0 : index
    %18 = vector.load %arg6[%c0_12, %c0_13] : memref<128x128xbf16, #tpu.memory_space<vmem>>, vector<128x128xbf16>
    %cst_14 = arith.constant dense<0.000000e+00> : vector<32x128xf32>
    %19 = tpu.matmul %17, %18, %cst_14 {dimension_numbers = #tpu.dot_dimension_numbers<[1], [0], [0], [1], [0, 0, 1, 1], [], []>} : vector<32x128xbf16>, vector<128x128xbf16>, vector<32x128xf32> -> vector<32x128xf32>
    %c0_15 = arith.constant 0 : index
    %c0_16 = arith.constant 0 : index
    %20 = vector.load %arg7[%c0_15, %c0_16] : memref<1x128xf32, #tpu.memory_space<vmem>>, vector<1x128xf32>
    %21 = vector.broadcast %20 : vector<1x128xf32> to vector<32x128xf32>
    %22 = arith.addf %19, %21 : vector<32x128xf32>
    %23 = tpu.iota {dimensions = array<i32: 1>} : vector<32x128xi32>
    %c10_i32 = arith.constant 10 : i32
    %24 = vector.broadcast %c10_i32 : i32 to vector<32x128xi32>
    %25 = arith.cmpi slt, %23, %24 : vector<32x128xi32>
    %cst_17 = arith.constant -1.000000e+30 : f32
    %26 = vector.broadcast %cst_17 : f32 to vector<32x128xf32>
    %27 = arith.select %25, %22, %26 : vector<32x128xi1>, vector<32x128xf32>
    %cst_18 = arith.constant dense<0xFF800000> : vector<32xf32>
    %28 = vector.multi_reduction <maximumf>, %27, %cst_18 [1] : vector<32x128xf32> to vector<32xf32>
    %29 = vector.shape_cast %28 : vector<32xf32> to vector<32x1xf32>
    %30 = vector.broadcast %29 : vector<32x1xf32> to vector<32x128xf32>
    %31 = arith.subf %27, %30 : vector<32x128xf32>
    %32 = math.exp %31 : vector<32x128xf32>
    %cst_19 = arith.constant dense<0.000000e+00> : vector<32xf32>
    %33 = vector.multi_reduction <add>, %32, %cst_19 [1] : vector<32x128xf32> to vector<32xf32>
    %34 = vector.shape_cast %33 : vector<32xf32> to vector<32x1xf32>
    %35 = math.log %34 : vector<32x1xf32>
    %36 = vector.broadcast %35 : vector<32x1xf32> to vector<32x128xf32>
    %37 = arith.subf %31, %36 : vector<32x128xf32>
    %cst_20 = arith.constant 0.000000e+00 : f32
    %38 = vector.broadcast %cst_20 : f32 to vector<32x128xf32>
    %39 = arith.select %25, %37, %38 : vector<32x128xi1>, vector<32x128xf32>
    %40 = arith.truncf %39 : vector<32x128xf32> to vector<32x128xbf16>
    %c0_21 = arith.constant 0 : index
    %c0_22 = arith.constant 0 : index
    %41 = vector.load %arg8[%c0_21, %c0_22] : memref<32x128xbf16, #tpu.memory_space<vmem>>, vector<32x128xbf16>
    tpu.vector_store %arg8[%c0_21, %c0_22], %40 {strides = array<i32>} : memref<32x128xbf16, #tpu.memory_space<vmem>>, vector<32x128xbf16>,
    return
  }
  func.func @transform_0(%arg0: i32) -> (i32, i32) {
    %c0_i32 = arith.constant 0 : i32
    %c0_i32_0 = arith.constant 0 : i32
    return %arg0, %c0_i32 : i32, i32
  }
  func.func @transform_1(%arg0: i32) -> (i32, i32) {
    %c0_i32 = arith.constant 0 : i32
    %c0_i32_0 = arith.constant 0 : i32
    %c0_i32_1 = arith.constant 0 : i32
    return %c0_i32, %c0_i32_0 : i32, i32
  }
  func.func @transform_2(%arg0: i32) -> (i32, i32) {
    %c0_i32 = arith.constant 0 : i32
    %c0_i32_0 = arith.constant 0 : i32
    %c0_i32_1 = arith.constant 0 : i32
    return %c0_i32, %c0_i32_0 : i32, i32
  }
  func.func @transform_3(%arg0: i32) -> (i32, i32) {
    %c0_i32 = arith.constant 0 : i32
    %c0_i32_0 = arith.constant 0 : i32
    %c0_i32_1 = arith.constant 0 : i32
    return %c0_i32, %c0_i32_0 : i32, i32
  }
  func.func @transform_4(%arg0: i32) -> (i32, i32) {
    %c0_i32 = arith.constant 0 : i32
    %c0_i32_0 = arith.constant 0 : i32
    %c0_i32_1 = arith.constant 0 : i32
    return %c0_i32, %c0_i32_0 : i32, i32
  }
  func.func @transform_5(%arg0: i32) -> (i32, i32) {
    %c0_i32 = arith.constant 0 : i32
    %c0_i32_0 = arith.constant 0 : i32
    %c0_i32_1 = arith.constant 0 : i32
    return %c0_i32, %c0_i32_0 : i32, i32
  }
  func.func @transform_6(%arg0: i32) -> (i32, i32) {
    %c0_i32 = arith.constant 0 : i32
    %c0_i32_0 = arith.constant 0 : i32
    %c0_i32_1 = arith.constant 0 : i32
    return %c0_i32, %c0_i32_0 : i32, i32
  }
  func.func @transform_7(%arg0: i32) -> (i32, i32) {
    %c0_i32 = arith.constant 0 : i32
    %c0_i32_0 = arith.constant 0 : i32
    return %arg0, %c0_i32 : i32, i32
  }
}

</mosaic_0001>

<bundles_post_ra>
// kernel: tpu_custom_call.1
= control target key start
LH: loop header
LB: loop body
LE: loop exit
PB: predicated region body
PF: predicated region fallthrough
CT: control target
= control target key end

     0   :  { %12 = vsyncpa [#allocation3], 0  ;;  %s3881_s0 = inlined_call_operand.hbm [shape: f32[32,1000], index: 0, kind: input, shape index: {}]   ;;  %s3882_s1 = inlined_call_operand.hbm [shape: bf16[1000,512], index: 1, kind: input, shape index: {}]   ;;  %s3883_s2 = inlined_call_operand.vmem [shape: f32[1,512], index: 2, kind: input, shape index: {}]   ;;  %s3884_s3 = inlined_call_operand.hbm [shape: bf16[512,128], index: 3, kind: input, shape index: {}]   ;;  %s3885_s4 = inlined_call_operand.vmem [shape: f32[1,128], index: 4, kind: input, shape index: {}]   ;;  %s3886_s5 = inlined_call_operand.hbm [shape: bf16[128,128], index: 5, kind: input, shape index: {}]   ;;  %s3887_s6 = inlined_call_operand.vmem [shape: f32[1,128], index: 6, kind: input, shape index: {}]   ;;  %s3888_s7 = inlined_call_operand.hbm [shape: bf16[32,128], index: 7, kind: output, shape index: {}]  }
   0x1   :  { %13 = vsyncpa [#allocation6], 0 }
   0x2   :  { %14 = vsyncpa [#allocation9], 0 }
   0x3   :  { %15 = vsyncpa [#allocation4], 0  ;;  %s3727_s24 = smov [#allocation5]   ;;  %s3609_s28 = scalar_lea.hbm %s3882_s1, 32000 }
   0x4   :  { %s33_s25 = sshll.u32 %s3727_s24, 4  ;;  %p3610_p0 = scmp.ne.s32.totalorder %s3882_s1, %s3609_s28  ;;  %s34_s25 = int_to_ptr.vmem [resolvable:$true] %s33_s25 }
   0x5   :  { %p3613_p1 = scmp.lt.u32.totalorder %s3609_s28, %s3882_s1 }
   0x7   :  { %p3615_p2 = pnand %p3613_p1, %p3610_p0 }
   0x9   :  { %3618 = shalt.err (!%p3615_p2)
}
   0xa   :  { %s3619_s10 = scalar_lea.vmem %s34_s25, 32000  ;;  %p3624_p4 = scmp.lt.s32.totalorder %s34_s25, %s34_s25 }
   0xb   :  { %p3620_p3 = scmp.ne.s32.totalorder %s34_s25, %s3619_s10  ;;  %p3625_p5 = scmp.lt.s32.totalorder %s3619_s10, %s3619_s10 }
   0xd   :  { %p3626_p6 = por %p3625_p5, %p3624_p4 }
   0xf   :  { %p3627_p7 = pnand %p3626_p6, %p3620_p3 }
  0x11   :  { %3630 = shalt.err (!%p3627_p7)
}
  0x12   :  { %s3728_s11 = smov 256   ;;  %s3729_s12 = smov 16  }
  0x13   :  { %39 = dma.hbm_to_vmem [thread:$0]  %s3882_s1, 32000, %s34_s25, [#allocation6], %s3728_s11, %s3728_s11, %s3729_s12  }
  0x14   :  { %s3730_s15 = smov [#allocation2]   ;;  %s3631_s19 = scalar_lea.hbm %s3881_s0, 4096 }
  0x15   :  { %s21_s16 = sshll.u32 %s3730_s15, 4  ;;  %p3632_p8 = scmp.ne.s32.totalorder %s3881_s0, %s3631_s19  ;;  %s22_s16 = int_to_ptr.vmem [resolvable:$true] %s21_s16 }
  0x16   :  { %p3635_p9 = scmp.lt.u32.totalorder %s3631_s19, %s3881_s0 }
  0x18   :  { %p3637_p10 = pnand %p3635_p9, %p3632_p8 }
  0x1a   :  { %3640 = shalt.err (!%p3637_p10)
}
  0x1b   :  { %s3641_s24 = scalar_lea.vmem %s22_s16, 4096  ;;  %p3646_p12 = scmp.lt.s32.totalorder %s22_s16, %s22_s16 }
  0x1c   :  { %p3642_p11 = scmp.ne.s32.totalorder %s22_s16, %s3641_s24  ;;  %p3647_p13 = scmp.lt.s32.totalorder %s3641_s24, %s3641_s24 }
  0x1e   :  { %p3648_p0 = por %p3647_p13, %p3646_p12 }
  0x20   :  { %p3649_p1 = pnand %p3648_p0, %p3642_p11 }
  0x22   :  { %3652 = shalt.err (!%p3649_p1)
}
  0x23   :  { %s3731_s1 = smov 1024   ;;  %s3732_s25 = smov 64  }
  0x24   :  { %27 = dma.hbm_to_vmem [thread:$0]  %s3881_s0, 4096, %s22_s16, [#allocation3], %s3731_s1, %s3731_s1, %s3732_s25  }
  0x25   :  { %s3733_s28 = smov [#allocation7]   ;;  %s3734_s30 = smov [#allocation8]  }
  0x26   :  { %s47_s29 = sshll.u32 %s3733_s28, 4  ;;  %s61_s8 = sshll.u32 %s3734_s30, 4  ;;  %s48_s29 = int_to_ptr.vmem [resolvable:$true] %s47_s29  ;;  %s62_s8 = int_to_ptr.vmem [resolvable:$true] %s61_s8 }
  0x27   :  { %s3653_s11 = scalar_lea.hbm %s3884_s3, 4096 }
  0x28   :  { %p3654_p2 = scmp.ne.s32.totalorder %s3884_s3, %s3653_s11  ;;  %p3657_p3 = scmp.lt.u32.totalorder %s3653_s11, %s3884_s3 }
  0x2a   :  { %p3659_p4 = pnand %p3657_p3, %p3654_p2 }
  0x2c   :  { %3662 = shalt.err (!%p3659_p4)
}
  0x2d   :  { %s3663_s0 = scalar_lea.vmem %s48_s29, 4096  ;;  %p3668_p6 = scmp.lt.s32.totalorder %s48_s29, %s48_s29 }
  0x2e   :  { %p3664_p5 = scmp.ne.s32.totalorder %s48_s29, %s3663_s0  ;;  %p3669_p7 = scmp.lt.s32.totalorder %s3663_s0, %s3663_s0 }
  0x30   :  { %p3670_p8 = por %p3669_p7, %p3668_p6 }
  0x32   :  { %p3671_p9 = pnand %p3670_p8, %p3664_p5 }
  0x34   :  { %3674 = shalt.err (!%p3671_p9)
}
  0x35   :  { %s3735_s16 = smov 4   ;;  %s3675_s21 = scalar_lea.hbm %s3886_s5, 1024 }
  0x36   :  { %53 = dma.hbm_to_vmem [thread:$0]  %s3884_s3, 4096, %s48_s29, [#allocation6], %s3732_s25, %s3732_s25, %s3735_s16  }
  0x37   :  { %p3676_p10 = scmp.ne.s32.totalorder %s3886_s5, %s3675_s21  ;;  %p3679_p11 = scmp.lt.u32.totalorder %s3675_s21, %s3886_s5 }
  0x39   :  { %p3681_p12 = pnand %p3679_p11, %p3676_p10 }
  0x3b   :  { %3684 = shalt.err (!%p3681_p12)
}
  0x3c   :  { %s3685_s26 = scalar_lea.vmem %s62_s8, 1024  ;;  %p3690_p0 = scmp.lt.s32.totalorder %s62_s8, %s62_s8 }
  0x3d   :  { %p3686_p13 = scmp.ne.s32.totalorder %s62_s8, %s3685_s26  ;;  %p3691_p1 = scmp.lt.s32.totalorder %s3685_s26, %s3685_s26 }
  0x3f   :  { %p3692_p2 = por %p3691_p1, %p3690_p0 }
  0x41   :  { %p3693_p3 = pnand %p3692_p2, %p3686_p13 }
  0x43   :  { %3696 = shalt.err (!%p3693_p3)
}
  0x44   :  { %67 = dma.hbm_to_vmem [thread:$0]  %s3886_s5, 1024, %s62_s8, [#allocation9], %s3732_s25, %s3732_s25, %s3735_s16  }
  0x45   :  { %3719 = dma.done.wait [#allocation3], 4096  }
  0x46   :  { %3720 = vsyncadd [#allocation3], 4294963200 }
  0x47   :  { %3721 = dma.done.wait [#allocation6], 36096  }
  0x48   :  { %3722 = vsyncadd [#allocation6], 4294931200 }
  0x49   :  { %3723 = dma.done.wait [#allocation9], 1024  }
  0x4a   :  { %3724 = vsyncadd [#allocation9], 4294966272  ;;  %v3177_v0 = vld [vmem:[#allocation5 + $0x4] ss:$16 sps:$4 sm:$0xff]   ;;  %v3179_v1 = vld [vmem:[#allocation5 + $0xc] ss:$16 sps:$4 sm:$0xff]  }
  0x4b   :  { %1673 = vmatprep.subr.bf16.mxu0 %v3177_v0  ;;  %v3181_v2 = vld [vmem:[#allocation5] ss:$16 sps:$4 sm:$0xff]   ;;  %v3182_v3 = vld [vmem:[#allocation5 + $0x8] ss:$16 sps:$4 sm:$0xff]   ;;  %1885 = vmatprep.subr.bf16.mxu1 %v3179_v1  ;;  %v3183_v4 = vld [vmem:[#allocation5 + $0x24] ss:$16 sps:$4 sm:$0xff]  }
  0x4c   :  { %1674 = vmatpush1.bf16.msra.mxu0 %v3181_v2  ;;  %1886 = vmatpush1.bf16.msra.mxu1 %v3182_v3  ;;  %v3185_v5 = vld [vmem:[#allocation5 + $0x2c] ss:$16 sps:$4 sm:$0xff]   ;;  %v3187_v6 = vld [vmem:[#allocation5 + $0x20] ss:$16 sps:$4 sm:$0xff]   ;;  %v3188_v7 = vld [vmem:[#allocation5 + $0x28] ss:$16 sps:$4 sm:$0xff]  }
  0x4d   :  { %1675 = vmatprep.subr.bf16.mxu0 %v3183_v4  ;;  %1887 = vmatprep.subr.bf16.mxu1 %v3185_v5  ;;  %v3189_v8 = vld [vmem:[#allocation5 + $0x44] ss:$16 sps:$4 sm:$0xff]   ;;  %v3191_v9 = vld [vmem:[#allocation5 + $0x4c] ss:$16 sps:$4 sm:$0xff]   ;;  %v3193_v10 = vld [vmem:[#allocation5 + $0x40] ss:$16 sps:$4 sm:$0xff]  }
  0x4e   :  { %v3194_v11 = vld [vmem:[#allocation5 + $0x48] ss:$16 sps:$4 sm:$0xff]   ;;  %v3195_v12 = vld [vmem:[#allocation5 + $0x64] ss:$16 sps:$4 sm:$0xff]   ;;  %v3197_v13 = vld [vmem:[#allocation5 + $0x6c] ss:$16 sps:$4 sm:$0xff]  }
  0x4f   :  { %v3199_v14 = vld [vmem:[#allocation5 + $0x60] ss:$16 sps:$4 sm:$0xff]   ;;  %v3200_v15 = vld [vmem:[#allocation5 + $0x68] ss:$16 sps:$4 sm:$0xff]   ;;  %v3201_v16 = vld [vmem:[#allocation5 + $0x84] ss:$16 sps:$4 sm:$0xff]  }
  0x50   :  { %1676 = vmatpush1.bf16.msra.mxu0 %v3187_v6  ;;  %1888 = vmatpush1.bf16.msra.mxu1 %v3188_v7  ;;  %v3203_v17 = vld [vmem:[#allocation5 + $0x8c] ss:$16 sps:$4 sm:$0xff]   ;;  %v3205_v18 = vld [vmem:[#allocation5 + $0x80] ss:$16 sps:$4 sm:$0xff]   ;;  %v3206_v19 = vld [vmem:[#allocation5 + $0x88] ss:$16 sps:$4 sm:$0xff]  }
  0x51   :  { %1677 = vmatprep.subr.bf16.mxu0 %v3189_v8  ;;  %1889 = vmatprep.subr.bf16.mxu1 %v3191_v9  ;;  %v3207_v20 = vld [vmem:[#allocation5 + $0xa4] ss:$16 sps:$4 sm:$0xff]   ;;  %v3209_v21 = vld [vmem:[#allocation5 + $0xac] ss:$16 sps:$4 sm:$0xff]   ;;  %v3211_v22 = vld [vmem:[#allocation5 + $0xa0] ss:$16 sps:$4 sm:$0xff]  }
  0x52   :  { %v3212_v23 = vld [vmem:[#allocation5 + $0xa8] ss:$16 sps:$4 sm:$0xff]   ;;  %v3213_v24 = vld [vmem:[#allocation5 + $0xc4] ss:$16 sps:$4 sm:$0xff]   ;;  %v3215_v25 = vld [vmem:[#allocation5 + $0xcc] ss:$16 sps:$4 sm:$0xff]  }
  0x53   :  { %v3217_v26 = vld [vmem:[#allocation5 + $0xc0] ss:$16 sps:$4 sm:$0xff]   ;;  %v3218_v27 = vld [vmem:[#allocation5 + $0xc8] ss:$16 sps:$4 sm:$0xff]   ;;  %v3219_v28 = vld [vmem:[#allocation5 + $0xe4] ss:$16 sps:$4 sm:$0xff]  }
  0x54   :  { %1678 = vmatpush1.bf16.msra.mxu0 %v3193_v10  ;;  %1890 = vmatpush1.bf16.msra.mxu1 %v3194_v11  ;;  %v3221_v29 = vld [vmem:[#allocation5 + $0xec] ss:$16 sps:$4 sm:$0xff]   ;;  %v3223_v30 = vld [vmem:[#allocation5 + $0xe0] ss:$16 sps:$4 sm:$0xff]   ;;  %v3224_v31 = vld [vmem:[#allocation5 + $0xe8] ss:$16 sps:$4 sm:$0xff]  }
  0x55   :  { %1679 = vmatprep.subr.bf16.mxu0 %v3195_v12  ;;  %1891 = vmatprep.subr.bf16.mxu1 %v3197_v13  ;;  %v3225_v32 = vld [vmem:[#allocation5 + $0x104] ss:$16 sps:$4 sm:$0xff]   ;;  %v3227_v33 = vld [vmem:[#allocation5 + $0x10c] ss:$16 sps:$4 sm:$0xff]   ;;  %v3229_v34 = vld [vmem:[#allocation5 + $0x100] ss:$16 sps:$4 sm:$0xff]  }
  0x56   :  { %v3230_v35 = vld [vmem:[#allocation5 + $0x108] ss:$16 sps:$4 sm:$0xff]   ;;  %v3231_v36 = vld [vmem:[#allocation5 + $0x124] ss:$16 sps:$4 sm:$0xff]   ;;  %v3233_v37 = vld [vmem:[#allocation5 + $0x12c] ss:$16 sps:$4 sm:$0xff]  }
  0x57   :  { %v3235_v38 = vld [vmem:[#allocation5 + $0x120] ss:$16 sps:$4 sm:$0xff]   ;;  %v3236_v39 = vld [vmem:[#allocation5 + $0x128] ss:$16 sps:$4 sm:$0xff]   ;;  %v3237_v40 = vld [vmem:[#allocation5 + $0x144] ss:$16 sps:$4 sm:$0xff]  }
  0x58   :  { %1680 = vmatpush1.bf16.msra.mxu0 %v3199_v14  ;;  %1892 = vmatpush1.bf16.msra.mxu1 %v3200_v15  ;;  %v3239_v41 = vld [vmem:[#allocation5 + $0x14c] ss:$16 sps:$4 sm:$0xff]   ;;  %v3241_v42 = vld [vmem:[#allocation5 + $0x140] ss:$16 sps:$4 sm:$0xff]   ;;  %v3242_v43 = vld [vmem:[#allocation5 + $0x148] ss:$16 sps:$4 sm:$0xff]  }
  0x59   :  { %1681 = vmatprep.subr.bf16.mxu0 %v3201_v16  ;;  %1893 = vmatprep.subr.bf16.mxu1 %v3203_v17  ;;  %v3243_v44 = vld [vmem:[#allocation5 + $0x164] ss:$16 sps:$4 sm:$0xff]   ;;  %v3245_v45 = vld [vmem:[#allocation5 + $0x16c] ss:$16 sps:$4 sm:$0xff]   ;;  %v3247_v48 = vld [vmem:[#allocation5 + $0x160] ss:$16 sps:$4 sm:$0xff]  }
  0x5a   :  { %v84_v46 = vld [vmem:[#allocation2 + $0x8] sm:$0xff]  ;;  %v3249_v51 = vld [vmem:[#allocation5 + $0x184] ss:$16 sps:$4 sm:$0xff]   ;;  %v3253_v53 = vld [vmem:[#allocation5 + $0x180] ss:$16 sps:$4 sm:$0xff]   ;;  %vm1653_vm0 = vcmask 850944  }
  0x5b   :  { %v92_v47 = vld [vmem:[#allocation2 + $0x48] sm:$0xff]  ;;  %v3255_v55 = vld [vmem:[#allocation5 + $0x1a4] ss:$16 sps:$4 sm:$0xff]   ;;  %v3259_v57 = vld [vmem:[#allocation5 + $0x1a0] ss:$16 sps:$4 sm:$0xff]   ;;  %vm1660_vm1 = vcmask 1043456  }
  0x5c   :  { %1682 = vmatpush1.bf16.msra.mxu0 %v3205_v18  ;;  %1894 = vmatpush1.bf16.msra.mxu1 %v3206_v19  ;;  %v3248_v49 = vld [vmem:[#allocation5 + $0x168] ss:$16 sps:$4 sm:$0xff]   ;;  %v116_v50 = vpack.c.bf16 %v92_v47, %v84_v46  ;;  %v3251_v52 = vld [vmem:[#allocation5 + $0x18c] ss:$16 sps:$4 sm:$0xff]   ;;  %v3261_v59 = vld [vmem:[#allocation5 + $0x1c4] ss:$16 sps:$4 sm:$0xff]  }
  0x5d   :  { %1683 = vmatprep.subr.bf16.mxu0 %v3207_v20  ;;  %1895 = vmatprep.subr.bf16.mxu1 %v3209_v21  ;;  %v3254_v54 = vld [vmem:[#allocation5 + $0x188] ss:$16 sps:$4 sm:$0xff]   ;;  %v3257_v56 = vld [vmem:[#allocation5 + $0x1ac] ss:$16 sps:$4 sm:$0xff]   ;;  %v3265_v61 = vld [vmem:[#allocation5 + $0x1c0] ss:$16 sps:$4 sm:$0xff]  }
  0x5e   :  { %1705 = vmatprep.mubr.bf16.mxu0 %v116_v50  ;;  %1917 = vmatprep.mubr.bf16.mxu1 %v116_v50  ;;  %v3260_v58 = vld [vmem:[#allocation5 + $0x1a8] ss:$16 sps:$4 sm:$0xff]   ;;  %v3263_v60 = vld [vmem:[#allocation5 + $0x1cc] ss:$16 sps:$4 sm:$0xff]   ;;  %v3267_v63 = vld [vmem:[#allocation5 + $0x1e4] ss:$16 sps:$4 sm:$0xff]  }
  0x5f   :  { %v3266_v62 = vld [vmem:[#allocation5 + $0x1c8] ss:$16 sps:$4 sm:$0xff]   ;;  %v3269_v0 = vld [vmem:[#allocation5 + $0x1ec] ss:$16 sps:$4 sm:$0xff]   ;;  %v3271_v1 = vld [vmem:[#allocation5 + $0x1e0] ss:$16 sps:$4 sm:$0xff]  }
  0x60   :  { %1684 = vmatpush1.bf16.msra.mxu0 %v3211_v22  ;;  %1896 = vmatpush1.bf16.msra.mxu1 %v3212_v23  ;;  %v3272_v2 = vld [vmem:[#allocation5 + $0x1e8] ss:$16 sps:$4 sm:$0xff]   ;;  %v3275_v3 = vld [vmem:[#allocation5 + $0x204] ss:$16 sps:$4 sm:$0xff]   ;;  %v3278_v6 = vld [vmem:[#allocation5 + $0x20c] ss:$16 sps:$4 sm:$0xff]  }
  0x61   :  { %1685 = vmatprep.subr.bf16.mxu0 %v3213_v24  ;;  %1897 = vmatprep.subr.bf16.mxu1 %v3215_v25  ;;  %v83_v4 = vld [vmem:[#allocation2] sm:$0xff]  ;;  %v3276_v8 = vld [vmem:[#allocation5 + $0x208] ss:$16 sps:$4 sm:$0xff]   ;;  %v3284_v11 = vld [vmem:[#allocation5 + $0x22c] ss:$16 sps:$4 sm:$0xff]  }
  0x62   :  { %v91_v5 = vld [vmem:[#allocation2 + $0x40] sm:$0xff]  ;;  %v3282_v13 = vld [vmem:[#allocation5 + $0x228] ss:$16 sps:$4 sm:$0xff]   ;;  %v3290_v15 = vld [vmem:[#allocation5 + $0x24c] ss:$16 sps:$4 sm:$0xff]  }
  0x63   :  { %v3273_v7 = vld [vmem:[#allocation5 + $0x200] ss:$16 sps:$4 sm:$0xff]   ;;  %v115_v9 = vpack.c.bf16 %v91_v5, %v83_v4  ;;  %v3281_v10 = vld [vmem:[#allocation5 + $0x224] ss:$16 sps:$4 sm:$0xff]   ;;  %v3288_v17 = vld [vmem:[#allocation5 + $0x248] ss:$16 sps:$4 sm:$0xff]  }
  0x64   :  { %1686 = vmatpush1.bf16.msra.mxu0 %v3217_v26  ;;  %1898 = vmatpush1.bf16.msra.mxu1 %v3218_v27  ;;  %v3279_v12 = vld [vmem:[#allocation5 + $0x220] ss:$16 sps:$4 sm:$0xff]   ;;  %v3287_v14 = vld [vmem:[#allocation5 + $0x244] ss:$16 sps:$4 sm:$0xff]   ;;  %v3296_v19 = vld [vmem:[#allocation5 + $0x26c] ss:$16 sps:$4 sm:$0xff]  }
  0x65   :  { %1687 = vmatprep.subr.bf16.mxu0 %v3219_v28  ;;  %1899 = vmatprep.subr.bf16.mxu1 %v3221_v29  ;;  %v3285_v16 = vld [vmem:[#allocation5 + $0x240] ss:$16 sps:$4 sm:$0xff]   ;;  %v3293_v18 = vld [vmem:[#allocation5 + $0x264] ss:$16 sps:$4 sm:$0xff]   ;;  %v3294_v21 = vld [vmem:[#allocation5 + $0x268] ss:$16 sps:$4 sm:$0xff]  }
  0x66   :  { %v3291_v20 = vld [vmem:[#allocation5 + $0x260] ss:$16 sps:$4 sm:$0xff]   ;;  %v3299_v22 = vld [vmem:[#allocation5 + $0x284] ss:$16 sps:$4 sm:$0xff]   ;;  %v3302_v23 = vld [vmem:[#allocation5 + $0x28c] ss:$16 sps:$4 sm:$0xff]  }
  0x67   :  { %v3297_v24 = vld [vmem:[#allocation5 + $0x280] ss:$16 sps:$4 sm:$0xff]   ;;  %v3300_v25 = vld [vmem:[#allocation5 + $0x288] ss:$16 sps:$4 sm:$0xff]   ;;  %v3305_v26 = vld [vmem:[#allocation5 + $0x2a4] ss:$16 sps:$4 sm:$0xff]  }
  0x68   :  { %1688 = vmatpush1.bf16.msra.mxu0 %v3223_v30  ;;  %1900 = vmatpush1.bf16.msra.mxu1 %v3224_v31  ;;  %v3308_v27 = vld [vmem:[#allocation5 + $0x2ac] ss:$16 sps:$4 sm:$0xff]   ;;  %v3303_v30 = vld [vmem:[#allocation5 + $0x2a0] ss:$16 sps:$4 sm:$0xff]   ;;  %v3318_v46 = vld [vmem:[#allocation5 + $0x2e8] ss:$16 sps:$4 sm:$0xff]  }
  0x69   :  { %1689 = vmatprep.subr.bf16.mxu0 %v3225_v32  ;;  %1901 = vmatprep.subr.bf16.mxu1 %v3227_v33  ;;  %v100_v28 = vld [vmem:[#allocation2 + $0x88] sm:$0xff]  ;;  %v3311_v33 = vld [vmem:[#allocation5 + $0x2c4] ss:$16 sps:$4 sm:$0xff]   ;;  %v3351_v5 = vld [vmem:[#allocation5 + $0x3a0] ss:$16 sps:$4 sm:$0xff]  }
  0x6a   :  { %v108_v29 = vld [vmem:[#allocation2 + $0xc8] sm:$0xff]  ;;  %v3323_v47 = vld [vmem:[#allocation5 + $0x304] ss:$16 sps:$4 sm:$0xff]  }
  0x6b   :  { %v124_v31 = vpack.c.bf16 %v108_v29, %v100_v28  ;;  %v3306_v32 = vld [vmem:[#allocation5 + $0x2a8] ss:$16 sps:$4 sm:$0xff]   ;;  %v3356_v4 = vld [vmem:[#allocation5 + $0x3ac] ss:$16 sps:$4 sm:$0xff]   ;;  %v101_v29 = vld [vmem:[#allocation2 + $0x90] sm:$0xff] }
  0x6c   :  { %1690 = vmatpush1.bf16.msra.mxu0 %v3229_v34  ;;  %1902 = vmatpush1.bf16.msra.mxu1 %v3230_v35  ;;  %v3314_v34 = vld [vmem:[#allocation5 + $0x2cc] ss:$16 sps:$4 sm:$0xff]   ;;  %v99_v35 = vld [vmem:[#allocation2 + $0x80] sm:$0xff]  ;;  %v3324_v50 = vld [vmem:[#allocation5 + $0x308] ss:$16 sps:$4 sm:$0xff]  }
  0x6d   :  { %1691 = vmatprep.subr.bf16.mxu0 %v3231_v36  ;;  %1903 = vmatprep.subr.bf16.mxu1 %v3233_v37  ;;  %v107_v36 = vld [vmem:[#allocation2 + $0xc0] sm:$0xff]  ;;  %v3378_v28 = vld [vmem:[#allocation5 + $0x428] ss:$16 sps:$4 sm:$0xff]  }
  0x6e   :  { %v123_v37 = vpack.c.bf16 %v107_v36, %v99_v35  ;;  %v96_v35 = vld [vmem:[#allocation2 + $0x68] sm:$0xff]  ;;  %v3381_v36 = vld [vmem:[#allocation5 + $0x440] ss:$16 sps:$4 sm:$0xff]  }
  0x70   :  { %1692 = vmatpush1.bf16.msra.mxu0 %v3235_v38  ;;  %1904 = vmatpush1.bf16.msra.mxu1 %v3236_v39  ;;  %v3309_v38 = vld [vmem:[#allocation5 + $0x2c0] ss:$16 sps:$4 sm:$0xff]   ;;  %v3312_v39 = vld [vmem:[#allocation5 + $0x2c8] ss:$16 sps:$4 sm:$0xff]  }
  0x71   :  { %1693 = vmatprep.subr.bf16.mxu0 %v3237_v40  ;;  %1905 = vmatprep.subr.bf16.mxu1 %v3239_v41  ;;  %v86_v40 = vld [vmem:[#allocation2 + $0x18] sm:$0xff] }
  0x72   :  { %v94_v41 = vld [vmem:[#allocation2 + $0x58] sm:$0xff] }
  0x74   :  { %1694 = vmatpush1.bf16.msra.mxu0 %v3241_v42  ;;  %1906 = vmatpush1.bf16.msra.mxu1 %v3242_v43  ;;  %v3317_v42 = vld [vmem:[#allocation5 + $0x2e4] ss:$16 sps:$4 sm:$0xff]   ;;  %v3320_v43 = vld [vmem:[#allocation5 + $0x2ec] ss:$16 sps:$4 sm:$0xff]  }
  0x75   :  { %1695 = vmatprep.subr.bf16.mxu0 %v3243_v44  ;;  %1907 = vmatprep.subr.bf16.mxu1 %v3245_v45  ;;  %v118_v44 = vpack.c.bf16 %v94_v41, %v86_v40  ;;  %v3315_v45 = vld [vmem:[#allocation5 + $0x2e0] ss:$16 sps:$4 sm:$0xff]  }
  0x76   :  { %v3387_v41 = vld [vmem:[#allocation5 + $0x460] ss:$16 sps:$4 sm:$0xff]  }
  0x78   :  { %1696 = vmatpush1.bf16.msra.mxu0 %v3247_v48  ;;  %1908 = vmatpush1.bf16.msra.mxu1 %v3248_v49  ;;  %v3326_v48 = vld [vmem:[#allocation5 + $0x30c] ss:$16 sps:$4 sm:$0xff]   ;;  %v3321_v49 = vld [vmem:[#allocation5 + $0x300] ss:$16 sps:$4 sm:$0xff]  }
  0x79   :  { %1697 = vmatprep.subr.bf16.mxu0 %v3249_v51  ;;  %1909 = vmatprep.subr.bf16.mxu1 %v3251_v52  ;;  %v3329_v51 = vld [vmem:[#allocation5 + $0x324] ss:$16 sps:$4 sm:$0xff]   ;;  %v3332_v52 = vld [vmem:[#allocation5 + $0x32c] ss:$16 sps:$4 sm:$0xff]  }
  0x7c   :  { %1698 = vmatpush1.bf16.msra.mxu0 %v3253_v53  ;;  %1910 = vmatpush1.bf16.msra.mxu1 %v3254_v54  ;;  %v3327_v53 = vld [vmem:[#allocation5 + $0x320] ss:$16 sps:$4 sm:$0xff]   ;;  %v3330_v54 = vld [vmem:[#allocation5 + $0x328] ss:$16 sps:$4 sm:$0xff]  }
  0x7d   :  { %1699 = vmatprep.subr.bf16.mxu0 %v3255_v55  ;;  %1911 = vmatprep.subr.bf16.mxu1 %v3257_v56  ;;  %v3335_v55 = vld [vmem:[#allocation5 + $0x344] ss:$16 sps:$4 sm:$0xff]   ;;  %v3338_v56 = vld [vmem:[#allocation5 + $0x34c] ss:$16 sps:$4 sm:$0xff]  }
  0x80   :  { %1700 = vmatpush1.bf16.msra.mxu0 %v3259_v57  ;;  %1912 = vmatpush1.bf16.msra.mxu1 %v3260_v58  ;;  %v3333_v57 = vld [vmem:[#allocation5 + $0x340] ss:$16 sps:$4 sm:$0xff]   ;;  %v3336_v58 = vld [vmem:[#allocation5 + $0x348] ss:$16 sps:$4 sm:$0xff]  }
  0x81   :  { %1701 = vmatprep.subr.bf16.mxu0 %v3261_v59  ;;  %1913 = vmatprep.subr.bf16.mxu1 %v3263_v60  ;;  %v3341_v59 = vld [vmem:[#allocation5 + $0x364] ss:$16 sps:$4 sm:$0xff]   ;;  %v3344_v60 = vld [vmem:[#allocation5 + $0x36c] ss:$16 sps:$4 sm:$0xff]  }
  0x84   :  { %1702 = vmatpush1.bf16.msra.mxu0 %v3265_v61  ;;  %1914 = vmatpush1.bf16.msra.mxu1 %v3266_v62  ;;  %v3339_v61 = vld [vmem:[#allocation5 + $0x360] ss:$16 sps:$4 sm:$0xff]   ;;  %v3342_v62 = vld [vmem:[#allocation5 + $0x368] ss:$16 sps:$4 sm:$0xff]  }
  0x85   :  { %1703 = vmatprep.subr.bf16.mxu0 %v3267_v63  ;;  %1915 = vmatprep.subr.bf16.mxu1 %v3269_v0  ;;  %v3347_v63 = vld [vmem:[#allocation5 + $0x384] ss:$16 sps:$4 sm:$0xff]   ;;  %v3350_v0 = vld [vmem:[#allocation5 + $0x38c] ss:$16 sps:$4 sm:$0xff]  }
  0x88   :  { %1704 = vmatpush1.bf16.msra.mxu0 %v3271_v1  ;;  %1916 = vmatpush1.bf16.msra.mxu1 %v3272_v2  ;;  %v3345_v1 = vld [vmem:[#allocation5 + $0x380] ss:$16 sps:$4 sm:$0xff]   ;;  %v3348_v2 = vld [vmem:[#allocation5 + $0x388] ss:$16 sps:$4 sm:$0xff]  }
  0x89   :  { %1726 = vmatprep.subr.bf16.mxu0 %v3275_v3  ;;  %1938 = vmatprep.subr.bf16.mxu1 %v3278_v6  ;;  %v3353_v3 = vld [vmem:[#allocation5 + $0x3a4] ss:$16 sps:$4 sm:$0xff]   ;;  %v3354_v6 = vld [vmem:[#allocation5 + $0x3a8] ss:$16 sps:$4 sm:$0xff]  }
  0x8b   :  { %1706 = vmatmul.mubr.bf16.vlgmr.msra.gmra.mrb[0].mxu0 %v115_v9  ;;  %1918 = vmatmul.mubr.bf16.vlgmr.msra.gmra.mrb[0].mxu1 %v115_v9  ;;  %v3357_v9 = vld [vmem:[#allocation5 + $0x3c0] ss:$16 sps:$4 sm:$0xff]  }
  0x8c   :  { %1727 = vmatpush1.bf16.msra.mxu0 %v3273_v7  ;;  %1939 = vmatpush1.bf16.msra.mxu1 %v3276_v8  ;;  %v3359_v7 = vld [vmem:[#allocation5 + $0x3c4] ss:$16 sps:$4 sm:$0xff]   ;;  %v3362_v8 = vld [vmem:[#allocation5 + $0x3cc] ss:$16 sps:$4 sm:$0xff]  }
  0x8d   :  { %1728 = vmatprep.subr.bf16.mxu0 %v3281_v10  ;;  %1940 = vmatprep.subr.bf16.mxu1 %v3284_v11  ;;  %v3360_v10 = vld [vmem:[#allocation5 + $0x3c8] ss:$16 sps:$4 sm:$0xff]   ;;  %v3365_v11 = vld [vmem:[#allocation5 + $0x3e4] ss:$16 sps:$4 sm:$0xff]  }
  0x8e   :  { %1715 = vmatprep.mubr.bf16.mxu0 %v124_v31  ;;  %1927 = vmatprep.mubr.bf16.mxu1 %v124_v31  ;;  %v3383_v31 = vld [vmem:[#allocation5 + $0x444] ss:$16 sps:$4 sm:$0xff]  }
  0x90   :  { %1729 = vmatpush1.bf16.msra.mxu0 %v3279_v12  ;;  %1941 = vmatpush1.bf16.msra.mxu1 %v3282_v13  ;;  %v3368_v12 = vld [vmem:[#allocation5 + $0x3ec] ss:$16 sps:$4 sm:$0xff]   ;;  %v3363_v13 = vld [vmem:[#allocation5 + $0x3e0] ss:$16 sps:$4 sm:$0xff]  }
  0x91   :  { %1730 = vmatprep.subr.bf16.mxu0 %v3287_v14  ;;  %1942 = vmatprep.subr.bf16.mxu1 %v3290_v15  ;;  %v3366_v14 = vld [vmem:[#allocation5 + $0x3e8] ss:$16 sps:$4 sm:$0xff]   ;;  %v3371_v15 = vld [vmem:[#allocation5 + $0x404] ss:$16 sps:$4 sm:$0xff]  }
  0x93   :  { %1716 = vmatmul.mubr.bf16.gmra.mrb[4].mxu0 %v123_v37  ;;  %1928 = vmatmul.mubr.bf16.gmra.mrb[4].mxu1 %v123_v37  ;;  %v3384_v37 = vld [vmem:[#allocation5 + $0x448] ss:$16 sps:$4 sm:$0xff]  }
  0x94   :  { %1731 = vmatpush1.bf16.msra.mxu0 %v3285_v16  ;;  %1943 = vmatpush1.bf16.msra.mxu1 %v3288_v17  ;;  %v85_v16 = vld [vmem:[#allocation2 + $0x10] sm:$0xff] }
  0x95   :  { %1732 = vmatprep.subr.bf16.mxu0 %v3293_v18  ;;  %1944 = vmatprep.subr.bf16.mxu1 %v3296_v19  ;;  %v93_v17 = vld [vmem:[#allocation2 + $0x50] sm:$0xff]  ;;  %v3374_v18 = vld [vmem:[#allocation5 + $0x40c] ss:$16 sps:$4 sm:$0xff]  }
  0x96   :  { %1758 = vmatprep.mubr.bf16.mxu0 %v118_v44  ;;  %1970 = vmatprep.mubr.bf16.mxu1 %v118_v44  ;;  %v102_v19 = vld [vmem:[#allocation2 + $0x98] sm:$0xff] }
  0x97   :  { %v3398_v44 = vld [vmem:[#allocation5 + $0x48c] ss:$16 sps:$4 sm:$0xff]  }
  0x98   :  { %1733 = vmatpush1.bf16.msra.mxu0 %v3291_v20  ;;  %1945 = vmatpush1.bf16.msra.mxu1 %v3294_v21  ;;  %v117_v20 = vpack.c.bf16 %v93_v17, %v85_v16  ;;  %v110_v21 = vld [vmem:[#allocation2 + $0xd8] sm:$0xff]  ;;  %v3447_v17 = vld [vmem:[#allocation5 + $0x5a0] ss:$16 sps:$4 sm:$0xff]  }
  0x99   :  { %1734 = vmatprep.subr.bf16.mxu0 %v3299_v22  ;;  %1946 = vmatprep.subr.bf16.mxu1 %v3302_v23  ;;  %v3369_v22 = vld [vmem:[#allocation5 + $0x400] ss:$16 sps:$4 sm:$0xff]   ;;  %v3372_v23 = vld [vmem:[#allocation5 + $0x408] ss:$16 sps:$4 sm:$0xff]   ;;  %v3452_v16 = vld [vmem:[#allocation5 + $0x5ac] ss:$16 sps:$4 sm:$0xff]  }
  0x9c   :  { %1735 = vmatpush1.bf16.msra.mxu0 %v3297_v24  ;;  %1947 = vmatpush1.bf16.msra.mxu1 %v3300_v25  ;;  %v3377_v24 = vld [vmem:[#allocation5 + $0x424] ss:$16 sps:$4 sm:$0xff]   ;;  %v3380_v25 = vld [vmem:[#allocation5 + $0x42c] ss:$16 sps:$4 sm:$0xff]  }
  0x9d   :  { %1736 = vmatprep.subr.bf16.mxu0 %v3305_v26  ;;  %1948 = vmatprep.subr.bf16.mxu1 %v3308_v27  ;;  %v3375_v26 = vld [vmem:[#allocation5 + $0x420] ss:$16 sps:$4 sm:$0xff]   ;;  %v126_v27 = vpack.c.bf16 %v110_v21, %v102_v19  ;;  %v3455_v19 = vld [vmem:[#allocation5 + $0x5c4] ss:$16 sps:$4 sm:$0xff]  }
  0x9e   :  { %v3453_v21 = vld [vmem:[#allocation5 + $0x5c0] ss:$16 sps:$4 sm:$0xff]  }
  0xa0   :  { %1737 = vmatpush1.bf16.msra.mxu0 %v3303_v30  ;;  %1949 = vmatpush1.bf16.msra.mxu1 %v3306_v32  ;;  %v109_v30 = vld [vmem:[#allocation2 + $0xd0] sm:$0xff]  ;;  %v3386_v32 = vld [vmem:[#allocation5 + $0x44c] ss:$16 sps:$4 sm:$0xff]  }
  0xa1   :  { %1738 = vmatprep.subr.bf16.mxu0 %v3311_v33  ;;  %1950 = vmatprep.subr.bf16.mxu1 %v3314_v34  ;;  %v88_v33 = vld [vmem:[#allocation2 + $0x28] sm:$0xff]  ;;  %v125_v34 = vpack.c.bf16 %v109_v30, %v101_v29  ;;  %v95_v29 = vld [vmem:[#allocation2 + $0x60] sm:$0xff] }
  0xa2   :  { %v120_v40 = vpack.c.bf16 %v96_v35, %v88_v33  ;;  %v3470_v30 = vld [vmem:[#allocation5 + $0x60c] ss:$16 sps:$4 sm:$0xff]  }
  0xa3   :  { %v104_v33 = vld [vmem:[#allocation2 + $0xa8] sm:$0xff] }
  0xa4   :  { %1739 = vmatpush1.bf16.msra.mxu0 %v3309_v38  ;;  %1951 = vmatpush1.bf16.msra.mxu1 %v3312_v39  ;;  %v3389_v38 = vld [vmem:[#allocation5 + $0x464] ss:$16 sps:$4 sm:$0xff]   ;;  %v3392_v39 = vld [vmem:[#allocation5 + $0x46c] ss:$16 sps:$4 sm:$0xff]  }
  0xa5   :  { %1740 = vmatprep.subr.bf16.mxu0 %v3317_v42  ;;  %1952 = vmatprep.subr.bf16.mxu1 %v3320_v43  ;;  %v3390_v42 = vld [vmem:[#allocation5 + $0x468] ss:$16 sps:$4 sm:$0xff]   ;;  %v3395_v43 = vld [vmem:[#allocation5 + $0x484] ss:$16 sps:$4 sm:$0xff]  }
  0xa6   :  { %v112_v35 = vld [vmem:[#allocation2 + $0xe8] sm:$0xff] }
  0xa8   :  { %1741 = vmatpush1.bf16.msra.mxu0 %v3315_v45  ;;  %1953 = vmatpush1.bf16.msra.mxu1 %v3318_v46  ;;  %v3393_v45 = vld [vmem:[#allocation5 + $0x480] ss:$16 sps:$4 sm:$0xff]   ;;  %v3396_v46 = vld [vmem:[#allocation5 + $0x488] ss:$16 sps:$4 sm:$0xff]  }
  0xa9   :  { %1742 = vmatprep.subr.bf16.mxu0 %v3323_v47  ;;  %1954 = vmatprep.subr.bf16.mxu1 %v3326_v48  ;;  %v3401_v47 = vld [vmem:[#allocation5 + $0x4a4] ss:$16 sps:$4 sm:$0xff]   ;;  %v3404_v48 = vld [vmem:[#allocation5 + $0x4ac] ss:$16 sps:$4 sm:$0xff]  }
  0xac   :  { %1743 = vmatpush1.bf16.msra.mxu0 %v3321_v49  ;;  %1955 = vmatpush1.bf16.msra.mxu1 %v3324_v50  ;;  %v3399_v49 = vld [vmem:[#allocation5 + $0x4a0] ss:$16 sps:$4 sm:$0xff]   ;;  %v3402_v50 = vld [vmem:[#allocation5 + $0x4a8] ss:$16 sps:$4 sm:$0xff]  }
  0xad   :  { %1744 = vmatprep.subr.bf16.mxu0 %v3329_v51  ;;  %1956 = vmatprep.subr.bf16.mxu1 %v3332_v52  ;;  %v3407_v51 = vld [vmem:[#allocation5 + $0x4c4] ss:$16 sps:$4 sm:$0xff]   ;;  %v3410_v52 = vld [vmem:[#allocation5 + $0x4cc] ss:$16 sps:$4 sm:$0xff]  }
  0xb0   :  { %1745 = vmatpush1.bf16.msra.mxu0 %v3327_v53  ;;  %1957 = vmatpush1.bf16.msra.mxu1 %v3330_v54  ;;  %v3405_v53 = vld [vmem:[#allocation5 + $0x4c0] ss:$16 sps:$4 sm:$0xff]   ;;  %v3408_v54 = vld [vmem:[#allocation5 + $0x4c8] ss:$16 sps:$4 sm:$0xff]  }
  0xb1   :  { %1746 = vmatprep.subr.bf16.mxu0 %v3335_v55  ;;  %1958 = vmatprep.subr.bf16.mxu1 %v3338_v56  ;;  %v3413_v55 = vld [vmem:[#allocation5 + $0x4e4] ss:$16 sps:$4 sm:$0xff]   ;;  %v3416_v56 = vld [vmem:[#allocation5 + $0x4ec] ss:$16 sps:$4 sm:$0xff]  }
  0xb4   :  { %1747 = vmatpush1.bf16.msra.mxu0 %v3333_v57  ;;  %1959 = vmatpush1.bf16.msra.mxu1 %v3336_v58  ;;  %v3411_v57 = vld [vmem:[#allocation5 + $0x4e0] ss:$16 sps:$4 sm:$0xff]   ;;  %v3414_v58 = vld [vmem:[#allocation5 + $0x4e8] ss:$16 sps:$4 sm:$0xff]  }
  0xb5   :  { %1748 = vmatprep.subr.bf16.mxu0 %v3341_v59  ;;  %1960 = vmatprep.subr.bf16.mxu1 %v3344_v60  ;;  %v3419_v59 = vld [vmem:[#allocation5 + $0x504] ss:$16 sps:$4 sm:$0xff]   ;;  %v3422_v60 = vld [vmem:[#allocation5 + $0x50c] ss:$16 sps:$4 sm:$0xff]  }
  0xb8   :  { %1749 = vmatpush1.bf16.msra.mxu0 %v3339_v61  ;;  %1961 = vmatpush1.bf16.msra.mxu1 %v3342_v62  ;;  %v3417_v61 = vld [vmem:[#allocation5 + $0x500] ss:$16 sps:$4 sm:$0xff]   ;;  %v3420_v62 = vld [vmem:[#allocation5 + $0x508] ss:$16 sps:$4 sm:$0xff]  }
  0xb9   :  { %1750 = vmatprep.subr.bf16.mxu0 %v3347_v63  ;;  %1962 = vmatprep.subr.bf16.mxu1 %v3350_v0  ;;  %v3425_v63 = vld [vmem:[#allocation5 + $0x524] ss:$16 sps:$4 sm:$0xff]   ;;  %v3428_v0 = vld [vmem:[#allocation5 + $0x52c] ss:$16 sps:$4 sm:$0xff]  }
  0xbc   :  { %1751 = vmatpush1.bf16.msra.mxu0 %v3345_v1  ;;  %1963 = vmatpush1.bf16.msra.mxu1 %v3348_v2  ;;  %v3423_v1 = vld [vmem:[#allocation5 + $0x520] ss:$16 sps:$4 sm:$0xff]   ;;  %v3426_v2 = vld [vmem:[#allocation5 + $0x528] ss:$16 sps:$4 sm:$0xff]  }
  0xbd   :  { %1752 = vmatprep.subr.bf16.mxu0 %v3353_v3  ;;  %1964 = vmatprep.subr.bf16.mxu1 %v3356_v4  ;;  %v3431_v3 = vld [vmem:[#allocation5 + $0x544] ss:$16 sps:$4 sm:$0xff]   ;;  %v3434_v4 = vld [vmem:[#allocation5 + $0x54c] ss:$16 sps:$4 sm:$0xff]  }
  0xc0   :  { %1753 = vmatpush1.bf16.msra.mxu0 %v3351_v5  ;;  %1965 = vmatpush1.bf16.msra.mxu1 %v3354_v6  ;;  %v3429_v5 = vld [vmem:[#allocation5 + $0x540] ss:$16 sps:$4 sm:$0xff]   ;;  %v3432_v6 = vld [vmem:[#allocation5 + $0x548] ss:$16 sps:$4 sm:$0xff]  }
  0xc1   :  { %1754 = vmatprep.subr.bf16.mxu0 %v3359_v7  ;;  %1966 = vmatprep.subr.bf16.mxu1 %v3362_v8  ;;  %v3437_v7 = vld [vmem:[#allocation5 + $0x564] ss:$16 sps:$4 sm:$0xff]   ;;  %v3440_v8 = vld [vmem:[#allocation5 + $0x56c] ss:$16 sps:$4 sm:$0xff]  }
  0xc4   :  { %1755 = vmatpush1.bf16.msra.mxu0 %v3357_v9  ;;  %1967 = vmatpush1.bf16.msra.mxu1 %v3360_v10  ;;  %v3435_v9 = vld [vmem:[#allocation5 + $0x560] ss:$16 sps:$4 sm:$0xff]   ;;  %v3438_v10 = vld [vmem:[#allocation5 + $0x568] ss:$16 sps:$4 sm:$0xff]  }
  0xc5   :  { %1756 = vmatprep.subr.bf16.mxu0 %v3365_v11  ;;  %1968 = vmatprep.subr.bf16.mxu1 %v3368_v12  ;;  %v3443_v11 = vld [vmem:[#allocation5 + $0x584] ss:$16 sps:$4 sm:$0xff]   ;;  %v3446_v12 = vld [vmem:[#allocation5 + $0x58c] ss:$16 sps:$4 sm:$0xff]  }
  0xc8   :  { %1757 = vmatpush1.bf16.msra.mxu0 %v3363_v13  ;;  %1969 = vmatpush1.bf16.msra.mxu1 %v3366_v14  ;;  %v3441_v13 = vld [vmem:[#allocation5 + $0x580] ss:$16 sps:$4 sm:$0xff]   ;;  %v3444_v14 = vld [vmem:[#allocation5 + $0x588] ss:$16 sps:$4 sm:$0xff]  }
  0xc9   :  { %1779 = vmatprep.subr.bf16.mxu0 %v3371_v15  ;;  %1991 = vmatprep.subr.bf16.mxu1 %v3374_v18  ;;  %v3449_v15 = vld [vmem:[#allocation5 + $0x5a4] ss:$16 sps:$4 sm:$0xff]   ;;  %v3450_v18 = vld [vmem:[#allocation5 + $0x5a8] ss:$16 sps:$4 sm:$0xff]  }
  0xcb   :  { %1759 = vmatmul.mubr.bf16.vlgmr.msra.gmra.mrb[0].mxu0 %v117_v20  ;;  %1971 = vmatmul.mubr.bf16.vlgmr.msra.gmra.mrb[0].mxu1 %v117_v20  ;;  %v3458_v20 = vld [vmem:[#allocation5 + $0x5cc] ss:$16 sps:$4 sm:$0xff]  }
  0xcc   :  { %1780 = vmatpush1.bf16.msra.mxu0 %v3369_v22  ;;  %1992 = vmatpush1.bf16.msra.mxu1 %v3372_v23  ;;  %v3456_v22 = vld [vmem:[#allocation5 + $0x5c8] ss:$16 sps:$4 sm:$0xff]   ;;  %v3461_v23 = vld [vmem:[#allocation5 + $0x5e4] ss:$16 sps:$4 sm:$0xff]  }
  0xcd   :  { %1781 = vmatprep.subr.bf16.mxu0 %v3377_v24  ;;  %1993 = vmatprep.subr.bf16.mxu1 %v3380_v25  ;;  %v3464_v24 = vld [vmem:[#allocation5 + $0x5ec] ss:$16 sps:$4 sm:$0xff]   ;;  %v3459_v25 = vld [vmem:[#allocation5 + $0x5e0] ss:$16 sps:$4 sm:$0xff]  }
  0xce   :  { %1768 = vmatprep.mubr.bf16.mxu0 %v126_v27  ;;  %1980 = vmatprep.mubr.bf16.mxu1 %v126_v27  ;;  %v3467_v27 = vld [vmem:[#allocation5 + $0x604] ss:$16 sps:$4 sm:$0xff]  }
  0xd0   :  { %1782 = vmatpush1.bf16.msra.mxu0 %v3375_v26  ;;  %1994 = vmatpush1.bf16.msra.mxu1 %v3378_v28  ;;  %v3462_v26 = vld [vmem:[#allocation5 + $0x5e8] ss:$16 sps:$4 sm:$0xff]   ;;  %v87_v28 = vld [vmem:[#allocation2 + $0x20] sm:$0xff] }
  0xd1   :  { %1783 = vmatprep.subr.bf16.mxu0 %v3383_v31  ;;  %1995 = vmatprep.subr.bf16.mxu1 %v3386_v32  ;;  %v3465_v31 = vld [vmem:[#allocation5 + $0x600] ss:$16 sps:$4 sm:$0xff]   ;;  %v3468_v32 = vld [vmem:[#allocation5 + $0x608] ss:$16 sps:$4 sm:$0xff]  }
  0xd3   :  { %1769 = vmatmul.mubr.bf16.gmra.mrb[4].mxu0 %v125_v34  ;;  %1981 = vmatmul.mubr.bf16.gmra.mrb[4].mxu1 %v125_v34  ;;  %v119_v34 = vpack.c.bf16 %v95_v29, %v87_v28  ;;  %v3548_v28 = vld [vmem:[#allocation5 + $0x7ac] ss:$16 sps:$4 sm:$0xff]   ;;  %v379_v29 = vld [vmem:[#allocation5 + $0x7c0] sm:$0xff] }
  0xd4   :  { %1784 = vmatpush1.bf16.msra.mxu0 %v3381_v36  ;;  %1996 = vmatpush1.bf16.msra.mxu1 %v3384_v37  ;;  %v3473_v36 = vld [vmem:[#allocation5 + $0x624] ss:$16 sps:$4 sm:$0xff]   ;;  %v3476_v37 = vld [vmem:[#allocation5 + $0x62c] ss:$16 sps:$4 sm:$0xff]  }
  0xd5   :  { %1785 = vmatprep.subr.bf16.mxu0 %v3389_v38  ;;  %1997 = vmatprep.subr.bf16.mxu1 %v3392_v39  ;;  %v3471_v38 = vld [vmem:[#allocation5 + $0x620] ss:$16 sps:$4 sm:$0xff]   ;;  %v3474_v39 = vld [vmem:[#allocation5 + $0x628] ss:$16 sps:$4 sm:$0xff]  }
  0xd6   :  { %1811 = vmatprep.mubr.bf16.mxu0 %v120_v40  ;;  %2023 = vmatprep.mubr.bf16.mxu1 %v120_v40  ;;  %v128_v40 = vpack.c.bf16 %v112_v35, %v104_v33  ;;  %v2947_v33 = vcombine.high %v379_v29, %v379_v29  ;;  %v2946_v35 = vcombine.low %v379_v29, %v379_v29 }
  0xd8   :  { %1786 = vmatpush1.bf16.msra.mxu0 %v3387_v41  ;;  %1998 = vmatpush1.bf16.msra.mxu1 %v3390_v42  ;;  %v3479_v41 = vld [vmem:[#allocation5 + $0x644] ss:$16 sps:$4 sm:$0xff]  }
  0xd9   :  { %1787 = vmatprep.subr.bf16.mxu0 %v3395_v43  ;;  %1999 = vmatprep.subr.bf16.mxu1 %v3398_v44  ;;  %v103_v42 = vld [vmem:[#allocation2 + $0xa0] sm:$0xff]  ;;  %v3482_v44 = vld [vmem:[#allocation5 + $0x64c] ss:$16 sps:$4 sm:$0xff]  }
  0xda   :  { %v111_v43 = vld [vmem:[#allocation2 + $0xe0] sm:$0xff] }
  0xdc   :  { %1788 = vmatpush1.bf16.msra.mxu0 %v3393_v45  ;;  %2000 = vmatpush1.bf16.msra.mxu1 %v3396_v46  ;;  %v3477_v45 = vld [vmem:[#allocation5 + $0x640] ss:$16 sps:$4 sm:$0xff]   ;;  %v3480_v46 = vld [vmem:[#allocation5 + $0x648] ss:$16 sps:$4 sm:$0xff]  }
  0xdd   :  { %1789 = vmatprep.subr.bf16.mxu0 %v3401_v47  ;;  %2001 = vmatprep.subr.bf16.mxu1 %v3404_v48  ;;  %v90_v47 = vld [vmem:[#allocation2 + $0x38] sm:$0xff] }
  0xde   :  { %v98_v48 = vld [vmem:[#allocation2 + $0x78] sm:$0xff] }
  0xe0   :  { %1790 = vmatpush1.bf16.msra.mxu0 %v3399_v49  ;;  %2002 = vmatpush1.bf16.msra.mxu1 %v3402_v50  ;;  %v3485_v49 = vld [vmem:[#allocation5 + $0x664] ss:$16 sps:$4 sm:$0xff]   ;;  %v3488_v50 = vld [vmem:[#allocation5 + $0x66c] ss:$16 sps:$4 sm:$0xff]  }
  0xe1   :  { %1791 = vmatprep.subr.bf16.mxu0 %v3407_v51  ;;  %2003 = vmatprep.subr.bf16.mxu1 %v3410_v52  ;;  %v127_v51 = vpack.c.bf16 %v111_v43, %v103_v42  ;;  %v3483_v52 = vld [vmem:[#allocation5 + $0x660] ss:$16 sps:$4 sm:$0xff]   ;;  %v114_v42 = vld [vmem:[#allocation2 + $0xf8] sm:$0xff] }
  0xe2   :  { %v3553_v43 = vld [vmem:[#allocation7 + $0x40] sm:$0xff]  }
  0xe4   :  { %1792 = vmatpush1.bf16.msra.mxu0 %v3405_v53  ;;  %2004 = vmatpush1.bf16.msra.mxu1 %v3408_v54  ;;  %v3486_v53 = vld [vmem:[#allocation5 + $0x668] ss:$16 sps:$4 sm:$0xff]   ;;  %v122_v54 = vpack.c.bf16 %v98_v48, %v90_v47  ;;  %v3555_v47 = vld [vmem:[#allocation7] sm:$0xff]  }
  0xe5   :  { %1793 = vmatprep.subr.bf16.mxu0 %v3413_v55  ;;  %2005 = vmatprep.subr.bf16.mxu1 %v3416_v56  ;;  %v3491_v55 = vld [vmem:[#allocation5 + $0x684] ss:$16 sps:$4 sm:$0xff]   ;;  %v3494_v56 = vld [vmem:[#allocation5 + $0x68c] ss:$16 sps:$4 sm:$0xff]  }
  0xe6   :  { %v3556_v48 = vld [vmem:[#allocation7 + $0x80] sm:$0xff]  }
  0xe8   :  { %1794 = vmatpush1.bf16.msra.mxu0 %v3411_v57  ;;  %2006 = vmatpush1.bf16.msra.mxu1 %v3414_v58  ;;  %v3489_v57 = vld [vmem:[#allocation5 + $0x680] ss:$16 sps:$4 sm:$0xff]   ;;  %v3492_v58 = vld [vmem:[#allocation5 + $0x688] ss:$16 sps:$4 sm:$0xff]  }
  0xe9   :  { %1795 = vmatprep.subr.bf16.mxu0 %v3419_v59  ;;  %2007 = vmatprep.subr.bf16.mxu1 %v3422_v60  ;;  %v3497_v59 = vld [vmem:[#allocation5 + $0x6a4] ss:$16 sps:$4 sm:$0xff]   ;;  %v3500_v60 = vld [vmem:[#allocation5 + $0x6ac] ss:$16 sps:$4 sm:$0xff]  }
  0xec   :  { %1796 = vmatpush1.bf16.msra.mxu0 %v3417_v61  ;;  %2008 = vmatpush1.bf16.msra.mxu1 %v3420_v62  ;;  %v3495_v61 = vld [vmem:[#allocation5 + $0x6a0] ss:$16 sps:$4 sm:$0xff]   ;;  %v3498_v62 = vld [vmem:[#allocation5 + $0x6a8] ss:$16 sps:$4 sm:$0xff]  }
  0xed   :  { %1797 = vmatprep.subr.bf16.mxu0 %v3425_v63  ;;  %2009 = vmatprep.subr.bf16.mxu1 %v3428_v0  ;;  %v3503_v63 = vld [vmem:[#allocation5 + $0x6c4] ss:$16 sps:$4 sm:$0xff]   ;;  %v3506_v0 = vld [vmem:[#allocation5 + $0x6cc] ss:$16 sps:$4 sm:$0xff]  }
  0xf0   :  { %1798 = vmatpush1.bf16.msra.mxu0 %v3423_v1  ;;  %2010 = vmatpush1.bf16.msra.mxu1 %v3426_v2  ;;  %v3501_v1 = vld [vmem:[#allocation5 + $0x6c0] ss:$16 sps:$4 sm:$0xff]   ;;  %v3504_v2 = vld [vmem:[#allocation5 + $0x6c8] ss:$16 sps:$4 sm:$0xff]  }
  0xf1   :  { %1799 = vmatprep.subr.bf16.mxu0 %v3431_v3  ;;  %2011 = vmatprep.subr.bf16.mxu1 %v3434_v4  ;;  %v3509_v3 = vld [vmem:[#allocation5 + $0x6e4] ss:$16 sps:$4 sm:$0xff]   ;;  %v3512_v4 = vld [vmem:[#allocation5 + $0x6ec] ss:$16 sps:$4 sm:$0xff]  }
  0xf4   :  { %1800 = vmatpush1.bf16.msra.mxu0 %v3429_v5  ;;  %2012 = vmatpush1.bf16.msra.mxu1 %v3432_v6  ;;  %v3507_v5 = vld [vmem:[#allocation5 + $0x6e0] ss:$16 sps:$4 sm:$0xff]   ;;  %v3510_v6 = vld [vmem:[#allocation5 + $0x6e8] ss:$16 sps:$4 sm:$0xff]  }
  0xf5   :  { %1801 = vmatprep.subr.bf16.mxu0 %v3437_v7  ;;  %2013 = vmatprep.subr.bf16.mxu1 %v3440_v8  ;;  %v3515_v7 = vld [vmem:[#allocation5 + $0x704] ss:$16 sps:$4 sm:$0xff]   ;;  %v3518_v8 = vld [vmem:[#allocation5 + $0x70c] ss:$16 sps:$4 sm:$0xff]  }
  0xf8   :  { %1802 = vmatpush1.bf16.msra.mxu0 %v3435_v9  ;;  %2014 = vmatpush1.bf16.msra.mxu1 %v3438_v10  ;;  %v3513_v9 = vld [vmem:[#allocation5 + $0x700] ss:$16 sps:$4 sm:$0xff]   ;;  %v3516_v10 = vld [vmem:[#allocation5 + $0x708] ss:$16 sps:$4 sm:$0xff]  }
  0xf9   :  { %1803 = vmatprep.subr.bf16.mxu0 %v3443_v11  ;;  %2015 = vmatprep.subr.bf16.mxu1 %v3446_v12  ;;  %v3521_v11 = vld [vmem:[#allocation5 + $0x724] ss:$16 sps:$4 sm:$0xff]   ;;  %v3524_v12 = vld [vmem:[#allocation5 + $0x72c] ss:$16 sps:$4 sm:$0xff]  }
  0xfc   :  { %1804 = vmatpush1.bf16.msra.mxu0 %v3441_v13  ;;  %2016 = vmatpush1.bf16.msra.mxu1 %v3444_v14  ;;  %v3519_v13 = vld [vmem:[#allocation5 + $0x720] ss:$16 sps:$4 sm:$0xff]   ;;  %v3522_v14 = vld [vmem:[#allocation5 + $0x728] ss:$16 sps:$4 sm:$0xff]  }
  0xfd   :  { %1805 = vmatprep.subr.bf16.mxu0 %v3449_v15  ;;  %2017 = vmatprep.subr.bf16.mxu1 %v3452_v16  ;;  %v3527_v15 = vld [vmem:[#allocation5 + $0x744] ss:$16 sps:$4 sm:$0xff]   ;;  %v3530_v16 = vld [vmem:[#allocation5 + $0x74c] ss:$16 sps:$4 sm:$0xff]  }
 0x100   :  { %1806 = vmatpush1.bf16.msra.mxu0 %v3447_v17  ;;  %2018 = vmatpush1.bf16.msra.mxu1 %v3450_v18  ;;  %v3525_v17 = vld [vmem:[#allocation5 + $0x740] ss:$16 sps:$4 sm:$0xff]   ;;  %v3528_v18 = vld [vmem:[#allocation5 + $0x748] ss:$16 sps:$4 sm:$0xff]  }
 0x101   :  { %1807 = vmatprep.subr.bf16.mxu0 %v3455_v19  ;;  %2019 = vmatprep.subr.bf16.mxu1 %v3458_v20  ;;  %v3533_v19 = vld [vmem:[#allocation5 + $0x764] ss:$16 sps:$4 sm:$0xff]   ;;  %v3536_v20 = vld [vmem:[#allocation5 + $0x76c] ss:$16 sps:$4 sm:$0xff]  }
 0x104   :  { %1808 = vmatpush1.bf16.msra.mxu0 %v3453_v21  ;;  %2020 = vmatpush1.bf16.msra.mxu1 %v3456_v22  ;;  %v3531_v21 = vld [vmem:[#allocation5 + $0x760] ss:$16 sps:$4 sm:$0xff]   ;;  %v3534_v22 = vld [vmem:[#allocation5 + $0x768] ss:$16 sps:$4 sm:$0xff]  }
 0x105   :  { %1809 = vmatprep.subr.bf16.mxu0 %v3461_v23  ;;  %2021 = vmatprep.subr.bf16.mxu1 %v3464_v24  ;;  %v3539_v23 = vld [vmem:[#allocation5 + $0x784] ss:$16 sps:$4 sm:$0xff]   ;;  %v3542_v24 = vld [vmem:[#allocation5 + $0x78c] ss:$16 sps:$4 sm:$0xff]  }
 0x108   :  { %1810 = vmatpush1.bf16.msra.mxu0 %v3459_v25  ;;  %2022 = vmatpush1.bf16.msra.mxu1 %v3462_v26  ;;  %v3537_v25 = vld [vmem:[#allocation5 + $0x780] ss:$16 sps:$4 sm:$0xff]   ;;  %v3540_v26 = vld [vmem:[#allocation5 + $0x788] ss:$16 sps:$4 sm:$0xff]  }
 0x109   :  { %1832 = vmatprep.subr.bf16.mxu0 %v3467_v27  ;;  %2044 = vmatprep.subr.bf16.mxu1 %v3470_v30  ;;  %v3545_v27 = vld [vmem:[#allocation5 + $0x7a4] ss:$16 sps:$4 sm:$0xff]   ;;  %v380_v30 = vld [vmem:[#allocation5 + $0x7c8] sm:$0xff] }
 0x10b   :  { %1812 = vmatmul.mubr.bf16.vlgmr.msra.gmra.mrb[0].mxu0 %v119_v34  ;;  %2024 = vmatmul.mubr.bf16.vlgmr.msra.gmra.mrb[0].mxu1 %v119_v34  ;;  %v2949_v34 = vcombine.high %v380_v30, %v380_v30 }
 0x10c   :  { %1833 = vmatpush1.bf16.msra.mxu0 %v3465_v31  ;;  %2045 = vmatpush1.bf16.msra.mxu1 %v3468_v32  ;;  %v3543_v31 = vld [vmem:[#allocation5 + $0x7a0] ss:$16 sps:$4 sm:$0xff]   ;;  %v3546_v32 = vld [vmem:[#allocation5 + $0x7a8] ss:$16 sps:$4 sm:$0xff]  }
 0x10d   :  { %1834 = vmatprep.subr.bf16.mxu0 %v3473_v36  ;;  %2046 = vmatprep.subr.bf16.mxu1 %v3476_v37  ;;  %v2948_v36 = vcombine.low %v380_v30, %v380_v30  ;;  %v89_v37 = vld [vmem:[#allocation2 + $0x30] sm:$0xff] }
 0x10e   :  { %1821 = vmatprep.mubr.bf16.mxu0 %v128_v40  ;;  %2033 = vmatprep.mubr.bf16.mxu1 %v128_v40  ;;  %v1662_v40 = vsel %vm1660_vm1, %v2946_v35, 0 }
 0x110   :  { %1835 = vmatpush1.bf16.msra.mxu0 %v3471_v38  ;;  %2047 = vmatpush1.bf16.msra.mxu1 %v3474_v39  ;;  %v97_v38 = vld [vmem:[#allocation2 + $0x70] sm:$0xff]  ;;  %v106_v39 = vld [vmem:[#allocation2 + $0xb8] sm:$0xff] }
 0x111   :  { %1836 = vmatprep.subr.bf16.mxu0 %v3479_v41  ;;  %2048 = vmatprep.subr.bf16.mxu1 %v3482_v44  ;;  %v1668_v41 = vsel %vm1660_vm1, %v2948_v36, 0  ;;  %v3554_v44 = vld [vmem:[#allocation7 + $0xc0] sm:$0xff]  }
 0x113   :  { %1822 = vmatmul.mubr.bf16.gmra.mrb[4].mxu0 %v127_v51  ;;  %2034 = vmatmul.mubr.bf16.gmra.mrb[4].mxu1 %v127_v51  ;;  %v105_v51 = vld [vmem:[#allocation2 + $0xb0] sm:$0xff] }
 0x114   :  { %1837 = vmatpush1.bf16.msra.mxu0 %v3477_v45  ;;  %2049 = vmatpush1.bf16.msra.mxu1 %v3480_v46  ;;  %v121_v45 = vpack.c.bf16 %v97_v38, %v89_v37  ;;  %v130_v46 = vpack.c.bf16 %v114_v42, %v106_v39 }
 0x115   :  { %1838 = vmatprep.subr.bf16.mxu0 %v3485_v49  ;;  %2050 = vmatprep.subr.bf16.mxu1 %v3488_v50  ;;  %v3557_v49 = vld [vmem:[#allocation7 + $0x48] sm:$0xff]  }
 0x116   :  { %2951 = vmatprep.mubr.msk.bf16.mxu0 %vm1653_vm0, %v122_v54  ;;  %2954 = vmatprep.mubr.msk.bf16.mxu1 %vm1653_vm0, %v122_v54  ;;  %v3558_v50 = vld [vmem:[#allocation7 + $0xc8] sm:$0xff]  }
 0x117   :  { %v3560_v54 = vld [vmem:[#allocation7 + $0x88] sm:$0xff]  }
 0x118   :  { %1839 = vmatpush1.bf16.msra.mxu0 %v3483_v52  ;;  %2051 = vmatpush1.bf16.msra.mxu1 %v3486_v53  ;;  %v113_v52 = vld [vmem:[#allocation2 + $0xf0] sm:$0xff]  ;;  %v3559_v53 = vld [vmem:[#allocation7 + $0x8] sm:$0xff]  }
 0x119   :  { %1840 = vmatprep.subr.bf16.mxu0 %v3491_v55  ;;  %2052 = vmatprep.subr.bf16.mxu1 %v3494_v56  ;;  %v3561_v55 = vld [vmem:[#allocation7 + $0x50] sm:$0xff]  }
 0x11a   :  { %v3562_v56 = vld [vmem:[#allocation7 + $0xd0] sm:$0xff]  }
 0x11c   :  { %1841 = vmatpush1.bf16.msra.mxu0 %v3489_v57  ;;  %2053 = vmatpush1.bf16.msra.mxu1 %v3492_v58  ;;  %v129_v57 = vpack.c.bf16 %v113_v52, %v105_v51  ;;  %v3563_v58 = vld [vmem:[#allocation7 + $0x10] sm:$0xff]  }
 0x11d   :  { %1842 = vmatprep.subr.bf16.mxu0 %v3497_v59  ;;  %2054 = vmatprep.subr.bf16.mxu1 %v3500_v60  ;;  %v3564_v59 = vld [vmem:[#allocation7 + $0x90] sm:$0xff]   ;;  %v3565_v60 = vld [vmem:[#allocation7 + $0x58] sm:$0xff]  }
 0x120   :  { %1843 = vmatpush1.bf16.msra.mxu0 %v3495_v61  ;;  %2055 = vmatpush1.bf16.msra.mxu1 %v3498_v62  ;;  %v3566_v61 = vld [vmem:[#allocation7 + $0xd8] sm:$0xff]  }
 0x121   :  { %1844 = vmatprep.subr.bf16.mxu0 %v3503_v63  ;;  %2056 = vmatprep.subr.bf16.mxu1 %v3506_v0  ;;  %v3567_v62 = vld [vmem:[#allocation7 + $0x18] sm:$0xff]   ;;  %v3569_v0 = vld [vmem:[#allocation7 + $0x60] sm:$0xff]  }
 0x122   :  { %v3568_v63 = vld [vmem:[#allocation7 + $0x98] sm:$0xff]  }
 0x124   :  { %1845 = vmatpush1.bf16.msra.mxu0 %v3501_v1  ;;  %2057 = vmatpush1.bf16.msra.mxu1 %v3504_v2  ;;  %v3570_v1 = vld [vmem:[#allocation7 + $0xe0] sm:$0xff]  }
 0x125   :  { %1846 = vmatprep.subr.bf16.mxu0 %v3509_v3  ;;  %2058 = vmatprep.subr.bf16.mxu1 %v3512_v4  ;;  %v3571_v2 = vld [vmem:[#allocation7 + $0x20] sm:$0xff]   ;;  %v3573_v4 = vld [vmem:[#allocation7 + $0x68] sm:$0xff]  }
 0x126   :  { %v3572_v3 = vld [vmem:[#allocation7 + $0xa0] sm:$0xff]  }
 0x128   :  { %1847 = vmatpush1.bf16.msra.mxu0 %v3507_v5  ;;  %2059 = vmatpush1.bf16.msra.mxu1 %v3510_v6  ;;  %v3574_v5 = vld [vmem:[#allocation7 + $0xe8] sm:$0xff]  }
 0x129   :  { %1848 = vmatprep.subr.bf16.mxu0 %v3515_v7  ;;  %2060 = vmatprep.subr.bf16.mxu1 %v3518_v8  ;;  %v3575_v6 = vld [vmem:[#allocation7 + $0x28] sm:$0xff]   ;;  %v3577_v8 = vld [vmem:[#allocation7 + $0x70] sm:$0xff]  }
 0x12a   :  { %v3576_v7 = vld [vmem:[#allocation7 + $0xa8] sm:$0xff]  }
 0x12c   :  { %1849 = vmatpush1.bf16.msra.mxu0 %v3513_v9  ;;  %2061 = vmatpush1.bf16.msra.mxu1 %v3516_v10  ;;  %v3578_v9 = vld [vmem:[#allocation7 + $0xf0] sm:$0xff]  }
 0x12d   :  { %1850 = vmatprep.subr.bf16.mxu0 %v3521_v11  ;;  %2062 = vmatprep.subr.bf16.mxu1 %v3524_v12  ;;  %v3579_v10 = vld [vmem:[#allocation7 + $0x30] sm:$0xff]   ;;  %v3581_v12 = vld [vmem:[#allocation7 + $0x78] sm:$0xff]  }
 0x12e   :  { %v3580_v11 = vld [vmem:[#allocation7 + $0xb0] sm:$0xff]  }
 0x130   :  { %1851 = vmatpush1.bf16.msra.mxu0 %v3519_v13  ;;  %2063 = vmatpush1.bf16.msra.mxu1 %v3522_v14  ;;  %v3582_v13 = vld [vmem:[#allocation7 + $0xf8] sm:$0xff]  }
 0x131   :  { %1852 = vmatprep.subr.bf16.mxu0 %v3527_v15  ;;  %2064 = vmatprep.subr.bf16.mxu1 %v3530_v16  ;;  %v3583_v14 = vld [vmem:[#allocation7 + $0x38] sm:$0xff]   ;;  %v3585_v16 = vld [vmem:[#allocation8] sm:$0xff]  }
 0x132   :  { %v3584_v15 = vld [vmem:[#allocation7 + $0xb8] sm:$0xff]  }
 0x134   :  { %1853 = vmatpush1.bf16.msra.mxu0 %v3525_v17  ;;  %2065 = vmatpush1.bf16.msra.mxu1 %v3528_v18  ;;  %v383_v17 = vlaneseq }
 0x135   :  { %1854 = vmatprep.subr.bf16.mxu0 %v3533_v19  ;;  %2066 = vmatprep.subr.bf16.mxu1 %v3536_v20 }
 0x136   :  { %v384_v18 = vshrl.u32 %v383_v17, 7 }
 0x138   :  { %1855 = vmatpush1.bf16.msra.mxu0 %v3531_v21  ;;  %2067 = vmatpush1.bf16.msra.mxu1 %v3534_v22  ;;  %v385_v19 = vsub.s32 0, %v384_v18  ;;  %v393_v20 = vsub.s32 2, %v384_v18  ;;  %v381_v21 = vld [vmem:[%s3883_s2] sm:$0xf]  ;;  %v389_v22 = vsub.s32 1, %v384_v18 }
 0x139   :  { %1856 = vmatprep.subr.bf16.mxu0 %v3539_v23  ;;  %2068 = vmatprep.subr.bf16.mxu1 %v3542_v24  ;;  %v397_v23 = vsub.s32 3, %v384_v18 }
 0x13a   :  { %v386_v24 = vrot.slane %v381_v21, %v385_v19 }
 0x13c   :  { %1857 = vmatpush1.bf16.msra.mxu0 %v3537_v25  ;;  %2069 = vmatpush1.bf16.msra.mxu1 %v3540_v26  ;;  %v394_v25 = vrot.slane %v381_v21, %v393_v20  ;;  %v390_v26 = vrot.slane %v381_v21, %v389_v22 }
 0x13d   :  { %1858 = vmatprep.subr.bf16.mxu0 %v3545_v27  ;;  %2070 = vmatprep.subr.bf16.mxu1 %v3548_v28  ;;  %v398_v27 = vrot.slane %v381_v21, %v397_v23 }
 0x140   :  { %1859 = vmatpush1.bf16.msra.mxu0 %v3543_v31  ;;  %2071 = vmatpush1.bf16.msra.mxu1 %v3546_v32 }
 0x141   :  { %2950 = vmatprep.subr.msk.bf16.mxu0 %vm1660_vm1, %v2947_v33  ;;  %2953 = vmatprep.subr.msk.bf16.mxu1 %vm1660_vm1, %v2949_v34 }
 0x144   :  { %1861 = vmatpush1.bf16.msra.mxu0 %v1662_v40  ;;  %2073 = vmatpush1.bf16.msra.mxu1 %v1668_v41 }
 0x145   :  { %3017 = vmatprep.subr.bf16.mxu0 %v3553_v43  ;;  %3045 = vmatprep.subr.bf16.mxu1 %v3554_v44 }
 0x147   :  { %1865 = vmatmul.mubr.bf16.vlgmr.msra.gmra.mrb[0].mxu0 %v121_v45  ;;  %2077 = vmatmul.mubr.bf16.vlgmr.msra.gmra.mrb[0].mxu1 %v121_v45 }
 0x148   :  { %2952 = vmatprep.mubr.msk.bf16.mxu0 %vm1653_vm0, %v130_v46  ;;  %2955 = vmatprep.mubr.msk.bf16.mxu1 %vm1653_vm0, %v130_v46 }
 0x149   :  { %3018 = vmatpush3.bf16.msra.mxu0 %v3555_v47  ;;  %3046 = vmatpush3.bf16.msra.mxu1 %v3556_v48 }
 0x14a   :  { %3019 = vmatprep.subr.bf16.mxu0 %v3557_v49  ;;  %3047 = vmatprep.subr.bf16.mxu1 %v3558_v50 }
 0x14d   :  { %3020 = vmatpush3.bf16.msra.mxu0 %v3559_v53  ;;  %3048 = vmatpush3.bf16.msra.mxu1 %v3560_v54 }
 0x14e   :  { %3021 = vmatprep.subr.bf16.mxu0 %v3561_v55  ;;  %3049 = vmatprep.subr.bf16.mxu1 %v3562_v56 }
 0x14f   :  { %1875 = vmatmul.mubr.bf16.gmra.mrb[4].mxu0 %v129_v57  ;;  %2087 = vmatmul.mubr.bf16.gmra.mrb[4].mxu1 %v129_v57 }
 0x151   :  { %3022 = vmatpush3.bf16.msra.mxu0 %v3563_v58  ;;  %3050 = vmatpush3.bf16.msra.mxu1 %v3564_v59 }
 0x152   :  { %3023 = vmatprep.subr.bf16.mxu0 %v3565_v60  ;;  %3051 = vmatprep.subr.bf16.mxu1 %v3566_v61 }
 0x155   :  { %3024 = vmatpush3.bf16.msra.mxu0 %v3567_v62  ;;  %3052 = vmatpush3.bf16.msra.mxu1 %v3568_v63  ;;  %v3586_v62 = vld [vmem:[#allocation8 + $0x8] sm:$0xff]  }
 0x156   :  { %3025 = vmatprep.subr.bf16.mxu0 %v3569_v0  ;;  %3053 = vmatprep.subr.bf16.mxu1 %v3570_v1 }
 0x159   :  { %3026 = vmatpush3.bf16.msra.mxu0 %v3571_v2  ;;  %3054 = vmatpush3.bf16.msra.mxu1 %v3572_v3 }
 0x15a   :  { %3027 = vmatprep.subr.bf16.mxu0 %v3573_v4  ;;  %3055 = vmatprep.subr.bf16.mxu1 %v3574_v5 }
 0x15d   :  { %3028 = vmatpush3.bf16.msra.mxu0 %v3575_v6  ;;  %3056 = vmatpush3.bf16.msra.mxu1 %v3576_v7 }
 0x15e   :  { %3029 = vmatprep.subr.bf16.mxu0 %v3577_v8  ;;  %3057 = vmatprep.subr.bf16.mxu1 %v3578_v9 }
 0x161   :  { %3030 = vmatpush3.bf16.msra.mxu0 %v3579_v10  ;;  %3058 = vmatpush3.bf16.msra.mxu1 %v3580_v11 }
 0x162   :  { %3031 = vmatprep.subr.bf16.mxu0 %v3581_v12  ;;  %3059 = vmatprep.subr.bf16.mxu1 %v3582_v13  ;;  %v3587_v13 = vld [vmem:[#allocation8 + $0x10] sm:$0xff]  }
 0x165   :  { %3032 = vmatpush3.bf16.msra.mxu0 %v3583_v14  ;;  %3060 = vmatpush3.bf16.msra.mxu1 %v3584_v15 }
 0x166   :  { %3083 = vmatprep.subr.bf16.mxu0 %v3585_v16 }
 0x21a   :  { %v1866_v28 = vpop.f32.mrb[0].mxu0  ;;  %v2078_v29 = vpop.f32.mrb[0].mxu1 }
 0x21b   :  { %v3103_v30 = vadd.f32 %v1866_v28, %v386_v24  ;;  %v3111_v31 = vadd.f32 %v2078_v29, %v394_v25  ;;  %v1868_v32 = vpop.f32.mrb[1].mxu0  ;;  %v2080_v33 = vpop.f32.mrb[1].mxu1 }
 0x21c   :  { %v3104_v34 = vadd.f32 %v1868_v32, %v390_v26  ;;  %v3112_v35 = vadd.f32 %v2080_v33, %v398_v27  ;;  %v1870_v36 = vpop.f32.mrb[2].mxu0  ;;  %v2082_v37 = vpop.f32.mrb[2].mxu1 }
 0x21d   :  { %v3105_v38 = vadd.f32 %v1870_v36, %v386_v24  ;;  %v3113_v39 = vadd.f32 %v2082_v37, %v394_v25  ;;  %v1872_v40 = vpop.f32.mrb[3].mxu0  ;;  %v2084_v41 = vpop.f32.mrb[3].mxu1  ;;  %v2097_v44 = vmax.f32 %v3103_v30, 0.0  ;;  %v2099_v45 = vmax.f32 %v3111_v31, 0.0  ;;  %v2956_v30 = vld [vmem:[%s3885_s4] ss:$0 sm:$0xff] }
 0x21e   :  { %v3106_v42 = vadd.f32 %v1872_v40, %v390_v26  ;;  %v3114_v43 = vadd.f32 %v2084_v41, %v398_v27  ;;  %v2098_v48 = vmax.f32 %v3104_v34, 0.0  ;;  %v2100_v49 = vmax.f32 %v3112_v35, 0.0 }
 0x21f   :  { %v2101_v46 = vmax.f32 %v3105_v38, 0.0  ;;  %v2103_v47 = vmax.f32 %v3113_v39, 0.0 }
 0x220   :  { %v2102_v50 = vmax.f32 %v3106_v42, 0.0  ;;  %v2104_v51 = vmax.f32 %v3114_v43, 0.0 }
 0x221   :  { %v2113_v52 = vpack.c.bf16 %v2101_v46, %v2097_v44  ;;  %v2115_v53 = vpack.c.bf16 %v2103_v47, %v2099_v45 }
 0x222   :  { %v2114_v54 = vpack.c.bf16 %v2102_v50, %v2098_v48  ;;  %v2116_v55 = vpack.c.bf16 %v2104_v51, %v2100_v49  ;;  %v1876_v56 = vpop.f32.mrb[4].mxu0  ;;  %v2088_v57 = vpop.f32.mrb[4].mxu1 }
 0x223   :  { %v3107_v58 = vadd.f32 %v1876_v56, %v386_v24  ;;  %v3115_v59 = vadd.f32 %v2088_v57, %v394_v25  ;;  %v1878_v60 = vpop.f32.mrb[5].mxu0  ;;  %v2090_v61 = vpop.f32.mrb[5].mxu1 }
 0x224   :  { %v3108_v63 = vadd.f32 %v1878_v60, %v390_v26  ;;  %v3116_v0 = vadd.f32 %v2090_v61, %v398_v27  ;;  %v1880_v1 = vpop.f32.mrb[6].mxu0  ;;  %v2092_v2 = vpop.f32.mrb[6].mxu1  ;;  %2416 = vmatprep.mubr.bf16.mxu0 %v2114_v54  ;;  %2465 = vmatprep.mubr.bf16.mxu1 %v2116_v55 }
 0x225   :  { %v3109_v3 = vadd.f32 %v1880_v1, %v386_v24  ;;  %v3117_v4 = vadd.f32 %v2092_v2, %v394_v25  ;;  %v1882_v5 = vpop.f32.mrb[7].mxu0  ;;  %v2094_v6 = vpop.f32.mrb[7].mxu1  ;;  %2417 = vmatmul.mubr.bf16.vlgmr.msra.gmra.mrb[8].mxu0 %v2113_v52  ;;  %2466 = vmatmul.mubr.bf16.vlgmr.msra.gmra.mrb[8].mxu1 %v2115_v53  ;;  %v2105_v9 = vmax.f32 %v3107_v58, 0.0  ;;  %v2107_v10 = vmax.f32 %v3115_v59, 0.0  ;;  %v3589_v24 = vld [vmem:[#allocation8 + $0x20] sm:$0xff]   ;;  %v3590_v25 = vld [vmem:[#allocation8 + $0x28] sm:$0xff]  }
 0x226   :  { %v3110_v7 = vadd.f32 %v1882_v5, %v390_v26  ;;  %v3118_v8 = vadd.f32 %v2094_v6, %v398_v27  ;;  %3084 = vmatpush3.bf16.msra.mxu0 %v3585_v16  ;;  %v2106_v14 = vmax.f32 %v3108_v63, 0.0  ;;  %v2108_v15 = vmax.f32 %v3116_v0, 0.0  ;;  %v3588_v16 = vld [vmem:[#allocation8 + $0x18] sm:$0xff]   ;;  %v3591_v26 = vld [vmem:[#allocation8 + $0x30] sm:$0xff]  }
 0x227   :  { %v2109_v11 = vmax.f32 %v3109_v3, 0.0  ;;  %v2111_v12 = vmax.f32 %v3117_v4, 0.0  ;;  %3085 = vmatprep.subr.bf16.mxu0 %v3586_v62  ;;  %v3592_v27 = vld [vmem:[#allocation8 + $0x38] sm:$0xff]   ;;  %v3844_v3 = vand.u32 127, %v383_v17  ;;  %v2989_v4 = vld [vmem:[%s3887_s6] ss:$0 sm:$0xff] }
 0x228   :  { %v2110_v18 = vmax.f32 %v3110_v7, 0.0  ;;  %v2112_v19 = vmax.f32 %v3118_v8, 0.0  ;;  %s3736_s6 = smov [#allocation10]  }
 0x229   :  { %v2117_v20 = vpack.c.bf16 %v2109_v11, %v2105_v9  ;;  %v2119_v21 = vpack.c.bf16 %v2111_v12, %v2107_v10  ;;  %vm2610_vm2 = vcmp.lt.s32.totalorder %v3844_v3, 10  ;;  %s2684_s8 = sshll.u32 %s3736_s6, 4  ;;  %s2685_s8 = int_to_ptr.vmem [resolvable:$true] %s2684_s8 }
 0x22a   :  { %v2118_v22 = vpack.c.bf16 %v2110_v18, %v2106_v14  ;;  %v2120_v23 = vpack.c.bf16 %v2112_v19, %v2108_v15  ;;  %3086 = vmatpush3.bf16.msra.mxu0 %v3586_v62  ;;  %s3697_s9 = scalar_lea.vmem %s2685_s8, 256  ;;  %p3702_p5 = scmp.lt.s32.totalorder %s2685_s8, %s2685_s8 }
 0x22b   :  { %3087 = vmatprep.subr.bf16.mxu0 %v3587_v13  ;;  %p3698_p4 = scmp.ne.s32.totalorder %s2685_s8, %s3697_s9  ;;  %p3703_p6 = scmp.lt.s32.totalorder %s3697_s9, %s3697_s9 }
 0x22c   :  { %2424 = vmatprep.mubr.bf16.mxu0 %v2118_v22  ;;  %2473 = vmatprep.mubr.bf16.mxu1 %v2120_v23 }
 0x22d   :  { %2425 = vmatmul.mubr.bf16.gmra.mrb[12].mxu0 %v2117_v20  ;;  %2474 = vmatmul.mubr.bf16.gmra.mrb[12].mxu1 %v2119_v21  ;;  %p3704_p7 = por %p3703_p6, %p3702_p5 }
 0x22e   :  { %3088 = vmatpush3.bf16.msra.mxu0 %v3587_v13 }
 0x22f   :  { %3089 = vmatprep.subr.bf16.mxu0 %v3588_v16  ;;  %p3705_p8 = pnand %p3704_p7, %p3698_p4 }
 0x232   :  { %3090 = vmatpush3.bf16.msra.mxu0 %v3588_v16 }
 0x233   :  { %3091 = vmatprep.subr.bf16.mxu0 %v3589_v24 }
 0x236   :  { %3092 = vmatpush3.bf16.msra.mxu0 %v3589_v24 }
 0x237   :  { %3093 = vmatprep.subr.bf16.mxu0 %v3590_v25 }
 0x23a   :  { %3094 = vmatpush3.bf16.msra.mxu0 %v3590_v25 }
 0x23b   :  { %3095 = vmatprep.subr.bf16.mxu0 %v3591_v26 }
 0x23e   :  { %3096 = vmatpush3.bf16.msra.mxu0 %v3591_v26 }
 0x23f   :  { %3097 = vmatprep.subr.bf16.mxu0 %v3592_v27 }
 0x242   :  { %3098 = vmatpush3.bf16.msra.mxu0 %v3592_v27 }
 0x2f8   :  { %v3033_v28 = vpop.f32.mrb[8].mxu0  ;;  %v3061_v29 = vpop.f32.mrb[8].mxu1 }
 0x2f9   :  { %v3034_v31 = vpop.f32.mrb[9].mxu0  ;;  %v3062_v32 = vpop.f32.mrb[9].mxu1 }
 0x2fa   :  { %v3035_v33 = vadd.f32 %v3034_v31, %v3033_v28  ;;  %v3063_v34 = vadd.f32 %v3062_v32, %v3061_v29  ;;  %v3036_v35 = vpop.f32.mrb[10].mxu0  ;;  %v3064_v36 = vpop.f32.mrb[10].mxu1 }
 0x2fb   :  { %v3037_v37 = vpop.f32.mrb[11].mxu0  ;;  %v3065_v38 = vpop.f32.mrb[11].mxu1 }
 0x2fc   :  { %v2419_v39 = vadd.f32 %v3035_v33, %v2956_v30  ;;  %v3038_v40 = vadd.f32 %v3037_v37, %v3036_v35  ;;  %v3066_v41 = vadd.f32 %v3065_v38, %v3064_v36 }
 0x2fe   :  { %v2468_v42 = vadd.f32 %v3063_v34, %v2419_v39  ;;  %v2422_v43 = vadd.f32 %v3038_v40, %v2956_v30 }
 0x300   :  { %v2471_v44 = vadd.f32 %v3066_v41, %v2422_v43  ;;  %v3039_v45 = vpop.f32.mrb[12].mxu0  ;;  %v3067_v46 = vpop.f32.mrb[12].mxu1  ;;  %v2482_v49 = vmax.f32 %v2468_v42, 0.0 }
 0x301   :  { %v3040_v47 = vpop.f32.mrb[13].mxu0  ;;  %v3068_v48 = vpop.f32.mrb[13].mxu1 }
 0x302   :  { %v2483_v50 = vmax.f32 %v2471_v44, 0.0  ;;  %v3041_v51 = vadd.f32 %v3040_v47, %v3039_v45  ;;  %v3069_v52 = vadd.f32 %v3068_v48, %v3067_v46  ;;  %v3042_v53 = vpop.f32.mrb[14].mxu0  ;;  %v3070_v54 = vpop.f32.mrb[14].mxu1 }
 0x303   :  { %v3043_v55 = vpop.f32.mrb[15].mxu0  ;;  %v3071_v56 = vpop.f32.mrb[15].mxu1 }
 0x304   :  { %v2427_v57 = vadd.f32 %v3041_v51, %v2956_v30  ;;  %v3044_v58 = vadd.f32 %v3043_v55, %v3042_v53  ;;  %v3072_v59 = vadd.f32 %v3071_v56, %v3070_v54  ;;  %v2486_v60 = vpack.c.bf16 %v2483_v50, %v2482_v49 }
 0x306   :  { %v2476_v61 = vadd.f32 %v3069_v52, %v2427_v57  ;;  %v2430_v62 = vadd.f32 %v3044_v58, %v2956_v30  ;;  %3099 = vmatprep.mubr.bf16.mxu0 %v2486_v60 }
 0x308   :  { %v2479_v63 = vadd.f32 %v3072_v59, %v2430_v62  ;;  %v2484_v0 = vmax.f32 %v2476_v61, 0.0 }
 0x30a   :  { %v2485_v1 = vmax.f32 %v2479_v63, 0.0 }
 0x30c   :  { %v2487_v2 = vpack.c.bf16 %v2485_v1, %v2484_v0 }
 0x30e   :  { %3100 = vmatmul.mubr.bf16.vlgmr.msra.gmra.mrb[16].mxu0 %v2487_v2 }
 0x3e1   :  { %v3101_v5 = vpop.f32.mrb[16].mxu0 }
 0x3e2   :  { %v2602_v6 = vadd.f32 %v3101_v5, %v2989_v4  ;;  %v2593_v7 = vpop.f32.mrb[17].mxu0 }
 0x3e3   :  { %v2594_v8 = vadd.f32 %v2989_v4, %v2593_v7  ;;  %v3102_v9 = vpop.f32.mrb[18].mxu0 }
 0x3e4   :  { %v2605_v10 = vadd.f32 %v3102_v9, %v2989_v4  ;;  %v2596_v11 = vpop.f32.mrb[19].mxu0  ;;  %v2613_v12 = vsel %vm2610_vm2, %v2602_v6, -1e+30 }
 0x3e5   :  { %v2597_v13 = vadd.f32 %v2989_v4, %v2596_v11  ;;  %2619 = vmax.xlane.f32.xlu1 %v2613_v12  ;;  %v2611_v17 = vsel %vm2610_vm2, %v2594_v8, -1e+30 }
 0x3e6   :  { %2615 = vmax.xlane.f32.xlu0 %v2611_v17  ;;  %v2614_v14 = vsel %vm2610_vm2, %v2605_v10, -1e+30 }
 0x3e7   :  { %v2612_v15 = vsel %vm2610_vm2, %v2597_v13, -1e+30 }
 0x3e9   :  { %2621 = vmax.xlane.f32.xlu1 %v2614_v14 }
 0x3ea   :  { %2617 = vmax.xlane.f32.xlu0 %v2612_v15 }
 0x472   :  { %v2620_v18 = vpop.xlane.xlu1 %2619 }
 0x473   :  { %v2625_v19 = vsub.f32 %v2613_v12, %v2620_v18  ;;  %v2616_v20 = vpop.xlane.xlu0 %2615 }
 0x474   :  { %v2623_v21 = vsub.f32 %v2611_v17, %v2616_v20 }
 0x475   :  { %v2631_v16 = vmul.f32 1.442695, %v2625_v19 }
 0x476   :  { %v2627_v22 = vmul.f32 1.442695, %v2623_v21  ;;  %v2622_v23 = vpop.xlane.xlu1 %2621 }
 0x477   :  { %v2618_v24 = vpop.xlane.xlu0 %2617  ;;  %v2626_v25 = vsub.f32 %v2614_v14, %v2622_v23 }
 0x478   :  { %3593 = vpow2.f32 %v2627_v22  ;;  %v2624_v26 = vsub.f32 %v2612_v15, %v2618_v24 }
 0x479   :  { %3595 = vpow2.f32 %v2631_v16  ;;  %v2633_v28 = vmul.f32 1.442695, %v2626_v25 }
 0x47a   :  { %v2629_v27 = vmul.f32 1.442695, %v2624_v26 }
 0x47c   :  { %3597 = vpow2.f32 %v2629_v27 }
 0x47d   :  { %3599 = vpow2.f32 %v2633_v28 }
 0x482   :  { %v3594_v29 = vpop.eup %3593 }
 0x483   :  { %2635 = vadd.xlane.f32.xlu0 %v3594_v29  ;;  %v3596_v30 = vpop.eup %3595 }
 0x486   :  { %v3598_v31 = vpop.eup %3597 }
 0x487   :  { %2639 = vadd.xlane.f32.xlu0 %v3596_v30  ;;  %2637 = vadd.xlane.f32.xlu1 %v3598_v31  ;;  %v3600_v32 = vpop.eup %3599 }
 0x48b   :  { %2641 = vadd.xlane.f32.xlu1 %v3600_v32 }
 0x510   :  { %v2636_v33 = vpop.xlane.xlu0 %2635 }
 0x511   :  { %3601 = vlog2.f32 %v2636_v33 }
 0x514   :  { %v2638_v34 = vpop.xlane.xlu1 %2637  ;;  %v2640_v35 = vpop.xlane.xlu0 %2639 }
 0x515   :  { %3603 = vlog2.f32 %v2638_v34 }
 0x516   :  { %3605 = vlog2.f32 %v2640_v35 }
 0x518   :  { %v2642_v36 = vpop.xlane.xlu1 %2641 }
 0x519   :  { %3607 = vlog2.f32 %v2642_v36 }
 0x51b   :  { %v3602_v37 = vpop.eup %3601 }
 0x51c   :  { %v2644_v38 = vmul.f32 0.6931472, %v3602_v37 }
 0x51e   :  { %v2651_v41 = vsub.f32 %v2623_v21, %v2644_v38 }
 0x51f   :  { %v3604_v39 = vpop.eup %3603 }
 0x520   :  { %v3606_v40 = vpop.eup %3605  ;;  %v2646_v42 = vmul.f32 0.6931472, %v3604_v39  ;;  %v2655_v48 = vsel %vm2610_vm2, %v2651_v41, 0.0 }
 0x521   :  { %v2648_v43 = vmul.f32 0.6931472, %v3606_v40 }
 0x522   :  { %v2652_v44 = vsub.f32 %v2624_v26, %v2646_v42 }
 0x523   :  { %v3608_v45 = vpop.eup %3607  ;;  %v2653_v46 = vsub.f32 %v2625_v19, %v2648_v43 }
 0x524   :  { %v2650_v47 = vmul.f32 0.6931472, %v3608_v45  ;;  %v2656_v49 = vsel %vm2610_vm2, %v2652_v44, 0.0 }
 0x525   :  { %v3009_v50 = vpack.c.bf16 %v2656_v49, %v2655_v48  ;;  %v2657_v52 = vsel %vm2610_vm2, %v2653_v46, 0.0 }
 0x526   :  { %v2654_v51 = vsub.f32 %v2626_v25, %v2650_v47 }
 0x527   :  { %3010 = vst [vmem:[#allocation10] sm:$0xff] %v3009_v50  }
 0x528   :  { %v2658_v53 = vsel %vm2610_vm2, %v2654_v51, 0.0 }
 0x529   :  { %v3014_v54 = vpack.c.bf16 %v2658_v53, %v2657_v52 }
 0x52b   :  { %3016 = vst [vmem:[#allocation10 + $0x8] sm:$0xff] %v3014_v54  }
 0x52c   :  { %3708 = shalt.err (!%p3705_p8)
}
 0x52d   :  { %s3709_s12 = scalar_lea.hbm %s3888_s7, 256 }
 0x52e   :  { %p3710_p9 = scmp.ne.s32.totalorder %s3888_s7, %s3709_s12  ;;  %p3713_p10 = scmp.lt.u32.totalorder %s3709_s12, %s3888_s7 }
 0x530   :  { %p3715_p11 = pnand %p3713_p10, %p3710_p9 }
 0x532   :  { %3718 = shalt.err (!%p3715_p11)
}
 0x533   :  { %2690 = dma.vmem_to_hbm [thread:$0]  %s2685_s8, 256, %s3888_s7, [#allocation4], %s3732_s25, %s3732_s25, %s3735_s16  }
 0x534   :  { %3725 = dma.done.wait [#allocation4], 256  }
 0x535   :  { %3726 = vsyncadd [#allocation4], 4294967040 }
 0x536   :  { %2694 = vsyncpa [#allocation3], 1 }
 0x537   :  { %2695 = vsyncpa [#allocation6], 1 }
 0x538   :  { %2696 = vsyncpa [#allocation9], 1 }
 0x539   :  { %2697 = vsyncpa [#allocation4], 1 }

</bundles_post_ra>
